<compile_context>
chip_gen: v5e
topology: v5e:2x2
jax: 0.10.0
libtpu: 0.0.40
codegen_flags: <defaults>
</compile_context>

<pallas_src>
import functools

import jax
import jax.numpy as jnp
from jax.experimental import pallas as pl
from jax.experimental.pallas import tpu as pltpu


def _round_up(x, m):
    return (x + m - 1) // m * m


def _row_chunks(H, chunk):
    """Static (start, size) row chunks covering [0, H)."""
    out, c0 = [], 0
    while c0 < H:
        ch = min(chunk, H - c0)
        out.append((c0, ch))
        c0 += ch
    return out


# --------------------------------- kernel -----------------------------------
def _soft_morph_kernel(x_ref, o_ref, buf_a, buf_b, *, n_erode, n_dilate,
                       ero_conn, dil_conn, chunk):
    """Fused soft erosion^n_erode then soft dilation^n_dilate.

    Block layout is channels-last: (H, W, L) with L = lane block of B*C.
    buf_a / buf_b are (H+2, W+2, L) f32 padded ping-pong buffers; the image
    interior lives at [1:1+H, 1:1+W, :] and the 1-px ring is held at 1.0
    (the erosion pad value, and (1 - 0) = the neutral factor of the dilation
    product over complements).
    """
    H, W, L = o_ref.shape
    f32 = jnp.float32
    n_stages = n_erode + n_dilate

    if n_stages == 0:                                    # degenerate: identity
        o_ref[...] = x_ref[...].astype(o_ref.dtype)
        return

    chunks = _row_chunks(H, chunk)
    bufs = [buf_a, buf_b]

    def ring_init(p):
        # Ring-only stores (not a full padded-buffer fill), once per grid step.
        # Deliberately NOT gated on pl.program_id(0)==0: megacore shards the
        # "parallel" grid axis across TensorCores, each with its own scratch,
        # so a program_id gate would leave one core's ring uninitialised.
        p[0:1, :, :] = jnp.ones((1, W + 2, L), f32)               # top halo row
        p[H + 1:H + 2, :, :] = jnp.ones((1, W + 2, L), f32)       # bottom halo row
        p[1:1 + H, 0:1, :] = jnp.ones((H, 1, L), f32)             # left halo col
        p[1:1 + H, W + 1:W + 2, :] = jnp.ones((H, 1, L), f32)     # right halo col

    ring_init(buf_a)
    if n_stages > 1:
        ring_init(buf_b)

    # Load the input block into buf_a's interior (complemented when the first
    # stage is a dilation), in row chunks to bound live-vreg pressure.
    first_is_dil = (n_erode == 0)
    for c0, ch in chunks:
        v = x_ref[c0:c0 + ch, :, :].astype(f32)
        buf_a[c0 + 1:c0 + 1 + ch, 1:1 + W, :] = (1.0 - v) if first_is_dil else v

    def stage_chunk(src, c0, ch, conn, is_erosion):
        """3x3 soft-morph product for image rows [c0, c0+ch).

        Reads per-offset window slices directly from the padded ref:
        dy offsets index the (untiled) outer axis, dx offsets are small
        sublane-offset slices.  Erosion multiplies by the center twice,
        matching the PyTorch reference (img * prod(window incl. center)).
        """
        if conn == 8:
            # Separable 3x3: row triple-products (2 muls) then the column
            # product of the three shifted row-products (2 muls).
            rows = (src[c0:c0 + ch + 2, 0:W, :]
                    * src[c0:c0 + ch + 2, 1:1 + W, :]
                    * src[c0:c0 + ch + 2, 2:2 + W, :])              # (ch+2, W, L)
            prod = rows[0:ch] * rows[1:1 + ch] * rows[2:2 + ch]     # (ch,   W, L)
            if is_erosion:
                prod = src[c0 + 1:c0 + 1 + ch, 1:1 + W, :] * prod   # center twice
        else:
            center = src[c0 + 1:c0 + 1 + ch, 1:1 + W, :]
            up = src[c0:c0 + ch, 1:1 + W, :]
            down = src[c0 + 2:c0 + 2 + ch, 1:1 + W, :]
            left = src[c0 + 1:c0 + 1 + ch, 0:W, :]
            right = src[c0 + 1:c0 + 1 + ch, 2:2 + W, :]
            prod = center * up * down * left * right
            if is_erosion:
                prod = center * prod                                # center twice
        return prod

    # Erosion stages operate on x; dilation stages operate on the complement
    # c = 1 - x (so neighbour factors are plain slices, no per-offset subtract).
    src_i = 0
    for s in range(n_stages):
        is_ero = s < n_erode
        conn = ero_conn if is_ero else dil_conn
        last = (s == n_stages - 1)
        flip = is_ero and (s == n_erode - 1) and (n_dilate > 0)   # x -> complement
        src, dst = bufs[src_i], bufs[1 - src_i]
        for c0, ch in chunks:
            val = stage_chunk(src, c0, ch, conn, is_ero)
            if last:
                # Lane-dense output store (full lanes, outer-axis row chunk).
                out_val = val if is_ero else 1.0 - val
                o_ref[c0:c0 + ch, :, :] = out_val.astype(o_ref.dtype)
            else:
                dst[c0 + 1:c0 + 1 + ch, 1:1 + W, :] = (1.0 - val) if flip else val
        src_i = 1 - src_i


# ------------------------------ size heuristics ------------------------------
def _vmem_budget():
    """Generation-aware VMEM working-set budget and compiler limit (bytes)."""
    try:
        cap = int(pltpu.get_tpu_info().vmem_capacity_bytes)
    except Exception:
        cap = 64 << 20                     # conservative: v7x has 64 MiB per TC
    budget = max(8 << 20, min(int(cap * 0.6), 48 << 20))
    limit = max(32 << 20, min(int(cap * 0.8), 100 << 20))
    return budget, limit


def _footprint_bytes(H, W, tl, itemsize):
    io = H * _round_up(W, 8) * _round_up(tl, 128) * itemsize
    pad = (H + 2) * _round_up(W + 2, 8) * _round_up(tl, 128) * 4
    return 4 * io + 2 * pad                # dbl-buffered in+out + ping-pong scratch


def _choose_lane_block(BC, H, W, itemsize, budget):
    """Lanes (of B*C) per grid step: biggest 128-multiple that fits the budget."""
    if BC <= 128:
        return BC                          # single (possibly lane-sparse) block
    tl_cap = (BC // 128) * 128
    if BC >= 4 * 128:                      # >=4 grid steps: pipelining + 2-TC megacore
        tl_cap = min(tl_cap, _round_up(-(-BC // 4), 128))
    tl = 128
    while tl + 128 <= tl_cap and _footprint_bytes(H, W, tl + 128, itemsize) <= budget:
        tl += 128
    return tl


def _choose_chunk_rows(H, W, tl):
    """Rows per inner chunk: keep the per-chunk live set to ~16 vregs/array."""
    vregs_per_row = (_round_up(W, 8) // 8) * (_round_up(tl, 128) // 128)
    ch = max(1, 16 // vregs_per_row)
    ch = max(ch, -(-H // 128))             # cap unrolled chunk count (compile time)
    ch = min(ch, H)
    n = -(-H // ch)
    return -(-H // n)                      # even-ish chunks


# --------------------------------- wrapper -----------------------------------
def _soft_morph_2d(img, *, n_erode, n_dilate, erosion_connectivity=4,
                   dilation_connectivity=4, io_dtype=None):
    assert img.ndim == 4, "expected [B, C, H, W]"
    B, C, H, W = img.shape
    BC = B * C
    x = img.reshape(BC, H, W)
    if io_dtype is not None:               # optional bf16 HBM I/O (f32 compute in-kernel)
        x = x.astype(io_dtype)

    # Channels-last relayout: B*C on the lane axis -> lane-dense stores when
    # BC >= 128; neighbour shifts become outer/sublane slices.
    xl = jnp.transpose(x, (1, 2, 0))       # (H, W, BC)

    budget, vmem_limit = _vmem_budget()
    itemsize = jnp.dtype(xl.dtype).itemsize
    tl = _choose_lane_block(BC, H, W, itemsize, budget)
    chunk = _choose_chunk_rows(H, W, tl)

    kernel = functools.partial(
        _soft_morph_kernel, n_erode=n_erode, n_dilate=n_dilate,
        ero_conn=erosion_connectivity, dil_conn=dilation_connectivity,
        chunk=chunk)

    out = pl.pallas_call(
        kernel,
        out_shape=jax.ShapeDtypeStruct((H, W, BC), xl.dtype),
        grid_spec=pltpu.PrefetchScalarGridSpec(
            num_scalar_prefetch=0,
            grid=(pl.cdiv(BC, tl),),
            in_specs=[pl.BlockSpec((H, W, tl), lambda i: (0, 0, i))],
            out_specs=pl.BlockSpec((H, W, tl), lambda i: (0, 0, i)),
            scratch_shapes=[
                pltpu.VMEM((H + 2, W + 2, tl), jnp.float32),
                pltpu.VMEM((H + 2, W + 2, tl), jnp.float32),
            ],
        ),
        input_output_aliases={0: 0},       # in/out shapes+dtypes match: reuse the HBM buffer
        compiler_params=pltpu.CompilerParams(
            dimension_semantics=("parallel",),
            vmem_limit_bytes=vmem_limit,
        ),
    )(xl)

    out = jnp.transpose(out, (2, 0, 1)).reshape(B, C, H, W)
    if io_dtype is not None:
        out = out.astype(img.dtype)
    return out


def soft_opening_2d(img, *, max_iter=1, erosion_connectivity=4,
                    dilation_connectivity=4, io_dtype=None):
    return _soft_morph_2d(img, n_erode=max_iter, n_dilate=max_iter,
                          erosion_connectivity=erosion_connectivity,
                          dilation_connectivity=dilation_connectivity,
                          io_dtype=io_dtype)


def soft_erosion_2d(img, *, max_iter=1, connectivity=4):
    return _soft_morph_2d(img, n_erode=max_iter, n_dilate=0,
                          erosion_connectivity=connectivity)


def soft_dilation_2d(img, *, max_iter=1, connectivity=4):
    return _soft_morph_2d(img, n_erode=0, n_dilate=max_iter,
                          dilation_connectivity=connectivity)


class SoftMorphTransform2D:
    """Pallas port of the PyTorch base class.

    The PyTorch `forward` is abstract; the canonical concrete composition
    (soft opening = erosion followed by dilation) is provided here.
    """
    # TODO(synk): PyTorch forward() is abstract; opening chosen as the concrete transform.

    def __init__(self, max_iter=1, dilation_connectivity=4, erosion_connectivity=4):
        self.max_iter = max_iter
        self.dilation_connectivity = dilation_connectivity
        self.erosion_connectivity = erosion_connectivity

    def _format(self, img):
        if img.ndim == 2:          # mimic test_format: [H, W] -> [1, 1, H, W]
            img = img[None, None]
        assert img.ndim == 4, "expected [B, C, H, W] or [H, W]"
        if not jnp.issubdtype(img.dtype, jnp.floating):
            img = img.astype(jnp.float32)
        return img

    def __call__(self, img):
        img = self._format(img)
        return soft_opening_2d(img, max_iter=self.max_iter,
                               erosion_connectivity=self.erosion_connectivity,
                               dilation_connectivity=self.dilation_connectivity)


# ----------------------------- pure-JAX reference ---------------------------
_OFFS4 = [(-1, 0), (0, 1), (1, 0), (0, -1)]
_OFFS8 = _OFFS4 + [(-1, 1), (1, 1), (1, -1), (-1, -1)]


def _ref_dilate(img, connectivity, max_iter):
    B, C, H, W = img.shape
    offs = (_OFFS4 if connectivity == 4 else _OFFS8) + [(0, 0)]
    for _ in range(max_iter):
        p = jnp.pad(img, ((0, 0), (0, 0), (1, 1), (1, 1)), constant_values=0.0)
        n = jnp.stack([p[:, :, 1 + dy:1 + dy + H, 1 + dx:1 + dx + W] for dy, dx in offs], -1)
        img = 1.0 - jnp.prod(1.0 - n, axis=-1)
    return img


def _ref_erode(img, connectivity, max_iter):
    B, C, H, W = img.shape
    offs = (_OFFS4 if connectivity == 4 else _OFFS8) + [(0, 0)]
    for _ in range(max_iter):
        p = jnp.pad(img, ((0, 0), (0, 0), (1, 1), (1, 1)), constant_values=1.0)
        n = jnp.stack([p[:, :, 1 + dy:1 + dy + H, 1 + dx:1 + dx + W] for dy, dx in offs], -1)
        img = img * jnp.prod(n, axis=-1)
    return img


if __name__ == "__main__":
    key = jax.random.PRNGKey(0)
    x = jax.random.uniform(key, (2, 4, 16, 16), dtype=jnp.float32)   # soft 2D image, NCHW

    # Default configuration (conn-4 opening, 1 iteration).
    transform = SoftMorphTransform2D(max_iter=1,
                                     dilation_connectivity=4,
                                     erosion_connectivity=4)
    out = jax.block_until_ready(transform(x))
    ref = _ref_dilate(_ref_erode(x, 4, 1), 4, 1)
    assert out.shape == (2, 4, 16, 16)
    assert jnp.allclose(out, ref, atol=1e-5, rtol=1e-5), "conn-4 opening mismatch"

    # conn-8, 2 iterations: exercises the separable 3x3 path and the fused
    # multi-iteration / representation-flip logic.
    transform8 = SoftMorphTransform2D(max_iter=2,
                                      dilation_connectivity=8,
                                      erosion_connectivity=8)
    out8 = jax.block_until_ready(transform8(x))
    ref8 = _ref_dilate(_ref_erode(x, 8, 2), 8, 2)
    assert jnp.allclose(out8, ref8, atol=1e-5, rtol=1e-5), "conn-8 opening mismatch"

    # Erosion-only and dilation-only helpers (cover n_dilate==0 and the
    # complemented initial-fill path for n_erode==0).
    ero = jax.block_until_ready(soft_erosion_2d(x, max_iter=2, connectivity=4))
    assert jnp.allclose(ero, _ref_erode(x, 4, 2), atol=1e-5, rtol=1e-5), "erosion mismatch"

    dil = jax.block_until_ready(soft_dilation_2d(x, max_iter=1, connectivity=8))
    assert jnp.allclose(dil, _ref_dilate(x, 8, 1), atol=1e-5, rtol=1e-5), "dilation mismatch"

    print("KERNEL_OK")
</pallas_src>

<mosaic_0001>
module attributes {stable_mosaic.version = 11 : i64} {
  func.func @_soft_morph_kernel(%arg0: i32, %arg1: memref<16x16x8xf32, #tpu.memory_space<vmem>>, %arg2: memref<16x16x8xf32, #tpu.memory_space<vmem>>, %arg3: memref<18x18x8xf32, #tpu.memory_space<vmem>>, %arg4: memref<18x18x8xf32, #tpu.memory_space<vmem>>) attributes {dimension_semantics = [#tpu.dimension_semantics<parallel>], iteration_bounds = array<i64: 1>, scalar_prefetch = 0 : i64, scratch_operands = 2 : i64, tpu.core_type = #tpu.core_type<tc>, window_params = [{transform_indices = @transform_0, window_bounds = array<i64: 16, 16, 8>}, {transform_indices = @transform_1, window_bounds = array<i64: 16, 16, 8>}]} {
    %cst = arith.constant 1.000000e+00 : f32
    %0 = vector.broadcast %cst : f32 to vector<1x18x8xf32>
    %c0 = arith.constant 0 : index
    %c0_0 = arith.constant 0 : index
    %c0_1 = arith.constant 0 : index
    %1 = vector.load %arg3[%c0, %c0_0, %c0_1] : memref<18x18x8xf32, #tpu.memory_space<vmem>>, vector<1x18x8xf32>
    tpu.vector_store %arg3[%c0, %c0_0, %c0_1], %0 {strides = array<i32>} : memref<18x18x8xf32, #tpu.memory_space<vmem>>, vector<1x18x8xf32>,
    %cst_2 = arith.constant 1.000000e+00 : f32
    %2 = vector.broadcast %cst_2 : f32 to vector<1x18x8xf32>
    %c17 = arith.constant 17 : index
    %c0_3 = arith.constant 0 : index
    %c0_4 = arith.constant 0 : index
    %3 = vector.load %arg3[%c17, %c0_3, %c0_4] : memref<18x18x8xf32, #tpu.memory_space<vmem>>, vector<1x18x8xf32>
    tpu.vector_store %arg3[%c17, %c0_3, %c0_4], %2 {strides = array<i32>} : memref<18x18x8xf32, #tpu.memory_space<vmem>>, vector<1x18x8xf32>,
    %cst_5 = arith.constant 1.000000e+00 : f32
    %4 = vector.broadcast %cst_5 : f32 to vector<16x1x8xf32>
    %c1 = arith.constant 1 : index
    %c0_6 = arith.constant 0 : index
    %c0_7 = arith.constant 0 : index
    %5 = vector.load %arg3[%c1, %c0_6, %c0_7] : memref<18x18x8xf32, #tpu.memory_space<vmem>>, vector<16x1x8xf32>
    tpu.vector_store %arg3[%c1, %c0_6, %c0_7], %4 {strides = array<i32>} : memref<18x18x8xf32, #tpu.memory_space<vmem>>, vector<16x1x8xf32>,
    %cst_8 = arith.constant 1.000000e+00 : f32
    %6 = vector.broadcast %cst_8 : f32 to vector<16x1x8xf32>
    %c1_9 = arith.constant 1 : index
    %c17_10 = arith.constant 17 : index
    %c0_11 = arith.constant 0 : index
    %7 = vector.load %arg3[%c1_9, %c17_10, %c0_11] : memref<18x18x8xf32, #tpu.memory_space<vmem>>, vector<16x1x8xf32>
    tpu.vector_store %arg3[%c1_9, %c17_10, %c0_11], %6 {strides = array<i32>} : memref<18x18x8xf32, #tpu.memory_space<vmem>>, vector<16x1x8xf32>,
    %cst_12 = arith.constant 1.000000e+00 : f32
    %8 = vector.broadcast %cst_12 : f32 to vector<1x18x8xf32>
    %c0_13 = arith.constant 0 : index
    %c0_14 = arith.constant 0 : index
    %c0_15 = arith.constant 0 : index
    %9 = vector.load %arg4[%c0_13, %c0_14, %c0_15] : memref<18x18x8xf32, #tpu.memory_space<vmem>>, vector<1x18x8xf32>
    tpu.vector_store %arg4[%c0_13, %c0_14, %c0_15], %8 {strides = array<i32>} : memref<18x18x8xf32, #tpu.memory_space<vmem>>, vector<1x18x8xf32>,
    %cst_16 = arith.constant 1.000000e+00 : f32
    %10 = vector.broadcast %cst_16 : f32 to vector<1x18x8xf32>
    %c17_17 = arith.constant 17 : index
    %c0_18 = arith.constant 0 : index
    %c0_19 = arith.constant 0 : index
    %11 = vector.load %arg4[%c17_17, %c0_18, %c0_19] : memref<18x18x8xf32, #tpu.memory_space<vmem>>, vector<1x18x8xf32>
    tpu.vector_store %arg4[%c17_17, %c0_18, %c0_19], %10 {strides = array<i32>} : memref<18x18x8xf32, #tpu.memory_space<vmem>>, vector<1x18x8xf32>,
    %cst_20 = arith.constant 1.000000e+00 : f32
    %12 = vector.broadcast %cst_20 : f32 to vector<16x1x8xf32>
    %c1_21 = arith.constant 1 : index
    %c0_22 = arith.constant 0 : index
    %c0_23 = arith.constant 0 : index
    %13 = vector.load %arg4[%c1_21, %c0_22, %c0_23] : memref<18x18x8xf32, #tpu.memory_space<vmem>>, vector<16x1x8xf32>
    tpu.vector_store %arg4[%c1_21, %c0_22, %c0_23], %12 {strides = array<i32>} : memref<18x18x8xf32, #tpu.memory_space<vmem>>, vector<16x1x8xf32>,
    %cst_24 = arith.constant 1.000000e+00 : f32
    %14 = vector.broadcast %cst_24 : f32 to vector<16x1x8xf32>
    %c1_25 = arith.constant 1 : index
    %c17_26 = arith.constant 17 : index
    %c0_27 = arith.constant 0 : index
    %15 = vector.load %arg4[%c1_25, %c17_26, %c0_27] : memref<18x18x8xf32, #tpu.memory_space<vmem>>, vector<16x1x8xf32>
    tpu.vector_store %arg4[%c1_25, %c17_26, %c0_27], %14 {strides = array<i32>} : memref<18x18x8xf32, #tpu.memory_space<vmem>>, vector<16x1x8xf32>,
    %c0_28 = arith.constant 0 : index
    %c0_29 = arith.constant 0 : index
    %c0_30 = arith.constant 0 : index
    %16 = vector.load %arg1[%c0_28, %c0_29, %c0_30] : memref<16x16x8xf32, #tpu.memory_space<vmem>>, vector<8x16x8xf32>
    %c1_31 = arith.constant 1 : index
    %c1_32 = arith.constant 1 : index
    %c0_33 = arith.constant 0 : index
    %17 = vector.load %arg3[%c1_31, %c1_32, %c0_33] : memref<18x18x8xf32, #tpu.memory_space<vmem>>, vector<8x16x8xf32>
    tpu.vector_store %arg3[%c1_31, %c1_32, %c0_33], %16 {strides = array<i32>} : memref<18x18x8xf32, #tpu.memory_space<vmem>>, vector<8x16x8xf32>,
    %c8 = arith.constant 8 : index
    %c0_34 = arith.constant 0 : index
    %c0_35 = arith.constant 0 : index
    %18 = vector.load %arg1[%c8, %c0_34, %c0_35] : memref<16x16x8xf32, #tpu.memory_space<vmem>>, vector<8x16x8xf32>
    %c9 = arith.constant 9 : index
    %c1_36 = arith.constant 1 : index
    %c0_37 = arith.constant 0 : index
    %19 = vector.load %arg3[%c9, %c1_36, %c0_37] : memref<18x18x8xf32, #tpu.memory_space<vmem>>, vector<8x16x8xf32>
    tpu.vector_store %arg3[%c9, %c1_36, %c0_37], %18 {strides = array<i32>} : memref<18x18x8xf32, #tpu.memory_space<vmem>>, vector<8x16x8xf32>,
    %c1_38 = arith.constant 1 : index
    %c1_39 = arith.constant 1 : index
    %c0_40 = arith.constant 0 : index
    %20 = vector.load %arg3[%c1_38, %c1_39, %c0_40] : memref<18x18x8xf32, #tpu.memory_space<vmem>>, vector<8x16x8xf32>
    %c0_41 = arith.constant 0 : index
    %c1_42 = arith.constant 1 : index
    %c0_43 = arith.constant 0 : index
    %21 = vector.load %arg3[%c0_41, %c1_42, %c0_43] : memref<18x18x8xf32, #tpu.memory_space<vmem>>, vector<8x16x8xf32>
    %c2 = arith.constant 2 : index
    %c1_44 = arith.constant 1 : index
    %c0_45 = arith.constant 0 : index
    %22 = vector.load %arg3[%c2, %c1_44, %c0_45] : memref<18x18x8xf32, #tpu.memory_space<vmem>>, vector<8x16x8xf32>
    %c1_46 = arith.constant 1 : index
    %c0_47 = arith.constant 0 : index
    %c0_48 = arith.constant 0 : index
    %23 = vector.load %arg3[%c1_46, %c0_47, %c0_48] : memref<18x18x8xf32, #tpu.memory_space<vmem>>, vector<8x16x8xf32>
    %c1_49 = arith.constant 1 : index
    %c2_50 = arith.constant 2 : index
    %c0_51 = arith.constant 0 : index
    %24 = vector.load %arg3[%c1_49, %c2_50, %c0_51] : memref<18x18x8xf32, #tpu.memory_space<vmem>>, vector<8x16x8xf32>
    %25 = arith.mulf %20, %21 : vector<8x16x8xf32>
    %26 = arith.mulf %25, %22 : vector<8x16x8xf32>
    %27 = arith.mulf %26, %23 : vector<8x16x8xf32>
    %28 = arith.mulf %27, %24 : vector<8x16x8xf32>
    %29 = arith.mulf %20, %28 : vector<8x16x8xf32>
    %cst_52 = arith.constant 1.000000e+00 : f32
    %30 = vector.broadcast %cst_52 : f32 to vector<8x16x8xf32>
    %31 = arith.subf %30, %29 : vector<8x16x8xf32>
    %c1_53 = arith.constant 1 : index
    %c1_54 = arith.constant 1 : index
    %c0_55 = arith.constant 0 : index
    %32 = vector.load %arg4[%c1_53, %c1_54, %c0_55] : memref<18x18x8xf32, #tpu.memory_space<vmem>>, vector<8x16x8xf32>
    tpu.vector_store %arg4[%c1_53, %c1_54, %c0_55], %31 {strides = array<i32>} : memref<18x18x8xf32, #tpu.memory_space<vmem>>, vector<8x16x8xf32>,
    %c9_56 = arith.constant 9 : index
    %c1_57 = arith.constant 1 : index
    %c0_58 = arith.constant 0 : index
    %33 = vector.load %arg3[%c9_56, %c1_57, %c0_58] : memref<18x18x8xf32, #tpu.memory_space<vmem>>, vector<8x16x8xf32>
    %c8_59 = arith.constant 8 : index
    %c1_60 = arith.constant 1 : index
    %c0_61 = arith.constant 0 : index
    %34 = vector.load %arg3[%c8_59, %c1_60, %c0_61] : memref<18x18x8xf32, #tpu.memory_space<vmem>>, vector<8x16x8xf32>
    %c10 = arith.constant 10 : index
    %c1_62 = arith.constant 1 : index
    %c0_63 = arith.constant 0 : index
    %35 = vector.load %arg3[%c10, %c1_62, %c0_63] : memref<18x18x8xf32, #tpu.memory_space<vmem>>, vector<8x16x8xf32>
    %c9_64 = arith.constant 9 : index
    %c0_65 = arith.constant 0 : index
    %c0_66 = arith.constant 0 : index
    %36 = vector.load %arg3[%c9_64, %c0_65, %c0_66] : memref<18x18x8xf32, #tpu.memory_space<vmem>>, vector<8x16x8xf32>
    %c9_67 = arith.constant 9 : index
    %c2_68 = arith.constant 2 : index
    %c0_69 = arith.constant 0 : index
    %37 = vector.load %arg3[%c9_67, %c2_68, %c0_69] : memref<18x18x8xf32, #tpu.memory_space<vmem>>, vector<8x16x8xf32>
    %38 = arith.mulf %33, %34 : vector<8x16x8xf32>
    %39 = arith.mulf %38, %35 : vector<8x16x8xf32>
    %40 = arith.mulf %39, %36 : vector<8x16x8xf32>
    %41 = arith.mulf %40, %37 : vector<8x16x8xf32>
    %42 = arith.mulf %33, %41 : vector<8x16x8xf32>
    %cst_70 = arith.constant 1.000000e+00 : f32
    %43 = vector.broadcast %cst_70 : f32 to vector<8x16x8xf32>
    %44 = arith.subf %43, %42 : vector<8x16x8xf32>
    %c9_71 = arith.constant 9 : index
    %c1_72 = arith.constant 1 : index
    %c0_73 = arith.constant 0 : index
    %45 = vector.load %arg4[%c9_71, %c1_72, %c0_73] : memref<18x18x8xf32, #tpu.memory_space<vmem>>, vector<8x16x8xf32>
    tpu.vector_store %arg4[%c9_71, %c1_72, %c0_73], %44 {strides = array<i32>} : memref<18x18x8xf32, #tpu.memory_space<vmem>>, vector<8x16x8xf32>,
    %c1_74 = arith.constant 1 : index
    %c1_75 = arith.constant 1 : index
    %c0_76 = arith.constant 0 : index
    %46 = vector.load %arg4[%c1_74, %c1_75, %c0_76] : memref<18x18x8xf32, #tpu.memory_space<vmem>>, vector<8x16x8xf32>
    %c0_77 = arith.constant 0 : index
    %c1_78 = arith.constant 1 : index
    %c0_79 = arith.constant 0 : index
    %47 = vector.load %arg4[%c0_77, %c1_78, %c0_79] : memref<18x18x8xf32, #tpu.memory_space<vmem>>, vector<8x16x8xf32>
    %c2_80 = arith.constant 2 : index
    %c1_81 = arith.constant 1 : index
    %c0_82 = arith.constant 0 : index
    %48 = vector.load %arg4[%c2_80, %c1_81, %c0_82] : memref<18x18x8xf32, #tpu.memory_space<vmem>>, vector<8x16x8xf32>
    %c1_83 = arith.constant 1 : index
    %c0_84 = arith.constant 0 : index
    %c0_85 = arith.constant 0 : index
    %49 = vector.load %arg4[%c1_83, %c0_84, %c0_85] : memref<18x18x8xf32, #tpu.memory_space<vmem>>, vector<8x16x8xf32>
    %c1_86 = arith.constant 1 : index
    %c2_87 = arith.constant 2 : index
    %c0_88 = arith.constant 0 : index
    %50 = vector.load %arg4[%c1_86, %c2_87, %c0_88] : memref<18x18x8xf32, #tpu.memory_space<vmem>>, vector<8x16x8xf32>
    %51 = arith.mulf %46, %47 : vector<8x16x8xf32>
    %52 = arith.mulf %51, %48 : vector<8x16x8xf32>
    %53 = arith.mulf %52, %49 : vector<8x16x8xf32>
    %54 = arith.mulf %53, %50 : vector<8x16x8xf32>
    %cst_89 = arith.constant 1.000000e+00 : f32
    %55 = vector.broadcast %cst_89 : f32 to vector<8x16x8xf32>
    %56 = arith.subf %55, %54 : vector<8x16x8xf32>
    %c0_90 = arith.constant 0 : index
    %c0_91 = arith.constant 0 : index
    %c0_92 = arith.constant 0 : index
    %57 = vector.load %arg2[%c0_90, %c0_91, %c0_92] : memref<16x16x8xf32, #tpu.memory_space<vmem>>, vector<8x16x8xf32>
    tpu.vector_store %arg2[%c0_90, %c0_91, %c0_92], %56 {strides = array<i32>} : memref<16x16x8xf32, #tpu.memory_space<vmem>>, vector<8x16x8xf32>,
    %c9_93 = arith.constant 9 : index
    %c1_94 = arith.constant 1 : index
    %c0_95 = arith.constant 0 : index
    %58 = vector.load %arg4[%c9_93, %c1_94, %c0_95] : memref<18x18x8xf32, #tpu.memory_space<vmem>>, vector<8x16x8xf32>
    %c8_96 = arith.constant 8 : index
    %c1_97 = arith.constant 1 : index
    %c0_98 = arith.constant 0 : index
    %59 = vector.load %arg4[%c8_96, %c1_97, %c0_98] : memref<18x18x8xf32, #tpu.memory_space<vmem>>, vector<8x16x8xf32>
    %c10_99 = arith.constant 10 : index
    %c1_100 = arith.constant 1 : index
    %c0_101 = arith.constant 0 : index
    %60 = vector.load %arg4[%c10_99, %c1_100, %c0_101] : memref<18x18x8xf32, #tpu.memory_space<vmem>>, vector<8x16x8xf32>
    %c9_102 = arith.constant 9 : index
    %c0_103 = arith.constant 0 : index
    %c0_104 = arith.constant 0 : index
    %61 = vector.load %arg4[%c9_102, %c0_103, %c0_104] : memref<18x18x8xf32, #tpu.memory_space<vmem>>, vector<8x16x8xf32>
    %c9_105 = arith.constant 9 : index
    %c2_106 = arith.constant 2 : index
    %c0_107 = arith.constant 0 : index
    %62 = vector.load %arg4[%c9_105, %c2_106, %c0_107] : memref<18x18x8xf32, #tpu.memory_space<vmem>>, vector<8x16x8xf32>
    %63 = arith.mulf %58, %59 : vector<8x16x8xf32>
    %64 = arith.mulf %63, %60 : vector<8x16x8xf32>
    %65 = arith.mulf %64, %61 : vector<8x16x8xf32>
    %66 = arith.mulf %65, %62 : vector<8x16x8xf32>
    %cst_108 = arith.constant 1.000000e+00 : f32
    %67 = vector.broadcast %cst_108 : f32 to vector<8x16x8xf32>
    %68 = arith.subf %67, %66 : vector<8x16x8xf32>
    %c8_109 = arith.constant 8 : index
    %c0_110 = arith.constant 0 : index
    %c0_111 = arith.constant 0 : index
    %69 = vector.load %arg2[%c8_109, %c0_110, %c0_111] : memref<16x16x8xf32, #tpu.memory_space<vmem>>, vector<8x16x8xf32>
    tpu.vector_store %arg2[%c8_109, %c0_110, %c0_111], %68 {strides = array<i32>} : memref<16x16x8xf32, #tpu.memory_space<vmem>>, vector<8x16x8xf32>,
    return
  }
  func.func @transform_0(%arg0: i32) -> (i32, i32, i32) {
    %c0_i32 = arith.constant 0 : i32
    %c0_i32_0 = arith.constant 0 : i32
    %c0_i32_1 = arith.constant 0 : i32
    return %c0_i32, %c0_i32_0, %arg0 : i32, i32, i32
  }
  func.func @transform_1(%arg0: i32) -> (i32, i32, i32) {
    %c0_i32 = arith.constant 0 : i32
    %c0_i32_0 = arith.constant 0 : i32
    %c0_i32_1 = arith.constant 0 : i32
    return %c0_i32, %c0_i32_0, %arg0 : i32, i32, i32
  }
}

</mosaic_0001>

<bundles_post_ra>
// kernel: tpu_custom_call.1
= control target key start
LH: loop header
LB: loop body
LE: loop exit
PB: predicated region body
PF: predicated region fallthrough
CT: control target
= control target key end

     0   :  { %vm8_vm0 = vcmask 64512   ;;  %v938_v0 = vmov 1.0   ;;  %vm11_vm1 = vcmask 58368   ;;  %vm18_vm2 = vcmask 57344   ;;  %s1643_s0 = inlined_call_operand.vmem [shape: f32[16,16,8], index: 0, kind: input, shape index: {}, may-alias: {0,1}]   ;;  %s1644_s1 = inlined_call_operand.vmem [shape: f32[16,16,8], index: 1, kind: output, shape index: {}, may-alias: {0,1}]  }
   0x1   :  { %9 = vst.msk [vmem:[#allocation2] sm:$0xff] %vm8_vm0, %v938_v0  ;;  %v91_v1 = vld [vmem:[%s1643_s0] sm:$0xff]  ;;  %v92_v2 = vld [vmem:[%s1643_s0 + $0x8] sm:$0xff]  ;;  %v93_v3 = vld [vmem:[%s1643_s0 + $0x10] sm:$0xff] }
   0x2   :  { %10 = vst.msk [vmem:[#allocation2 + $0x8] sm:$0xff] %vm8_vm0, %v938_v0  ;;  %v94_v4 = vld [vmem:[%s1643_s0 + $0x18] sm:$0xff]  ;;  %v95_v5 = vld [vmem:[%s1643_s0 + $0x20] sm:$0xff]  ;;  %v96_v6 = vld [vmem:[%s1643_s0 + $0x28] sm:$0xff] }
   0x3   :  { %14 = vst.msk [vmem:[#allocation2 + $0x198] sm:$0xff] %vm8_vm0, %v938_v0  ;;  %v97_v7 = vld [vmem:[%s1643_s0 + $0x30] sm:$0xff]  ;;  %v98_v8 = vld [vmem:[%s1643_s0 + $0x38] sm:$0xff]  ;;  %v99_v9 = vld [vmem:[%s1643_s0 + $0x40] sm:$0xff] }
   0x4   :  { %15 = vst.msk [vmem:[#allocation2 + $0x1a0] sm:$0xff] %vm8_vm0, %v938_v0  ;;  %v100_v11 = vld [vmem:[%s1643_s0 + $0x48] sm:$0xff]  ;;  %v101_v13 = vld [vmem:[%s1643_s0 + $0x50] sm:$0xff]  ;;  %v102_v15 = vld [vmem:[%s1643_s0 + $0x58] sm:$0xff] }
   0x5   :  { %51 = vst.msk [vmem:[#allocation3] sm:$0xff] %vm8_vm0, %v938_v0  ;;  %v103_v18 = vld [vmem:[%s1643_s0 + $0x60] sm:$0xff]  ;;  %v104_v19 = vld [vmem:[%s1643_s0 + $0x68] sm:$0xff]  ;;  %v105_v22 = vld [vmem:[%s1643_s0 + $0x70] sm:$0xff] }
   0x6   :  { %52 = vst.msk [vmem:[#allocation3 + $0x8] sm:$0xff] %vm8_vm0, %v938_v0  ;;  %v106_v23 = vld [vmem:[%s1643_s0 + $0x78] sm:$0xff]  ;;  %v905_v27 = vld [vmem:[%s1643_s0 + $0x80] sm:$0xff]  ;;  %v906_v32 = vld [vmem:[%s1643_s0 + $0x88] sm:$0xff] }
   0x7   :  { %55 = vst.msk [vmem:[#allocation3 + $0x198] sm:$0xff] %vm8_vm0, %v938_v0  ;;  %v907_v38 = vld [vmem:[%s1643_s0 + $0x90] sm:$0xff]  ;;  %v908_v45 = vld [vmem:[%s1643_s0 + $0x98] sm:$0xff] }
   0x8   :  { %56 = vst.msk [vmem:[#allocation3 + $0x1a0] sm:$0xff] %vm8_vm0, %v938_v0 }
   0x9   :  { %12 = vst.msk [vmem:[#allocation2 + $0x10] sm:$0x3] %vm11_vm1, %v938_v0  ;;  %v173_v10 = vld [vmem:[#allocation2 + $0x1] sm:$0xff] }
   0xa   :  { %16 = vst.msk [vmem:[#allocation2 + $0x1a8] sm:$0x3] %vm11_vm1, %v938_v0 }
   0xb   :  { %53 = vst.msk [vmem:[#allocation3 + $0x10] sm:$0x3] %vm11_vm1, %v938_v0 }
   0xc   :  { %57 = vst.msk [vmem:[#allocation3 + $0x1a8] sm:$0x3] %vm11_vm1, %v938_v0 }
   0xd   :  { %19 = vst.msk [vmem:[#allocation2 + $0x18] sm:$0x1] %vm18_vm2, %v938_v0 }
   0xe   :  { %20 = vst.msk [vmem:[#allocation2 + $0x30] sm:$0x1] %vm18_vm2, %v938_v0 }
   0xf   :  { %21 = vst.msk [vmem:[#allocation2 + $0x48] sm:$0x1] %vm18_vm2, %v938_v0 }
  0x10   :  { %22 = vst.msk [vmem:[#allocation2 + $0x60] sm:$0x1] %vm18_vm2, %v938_v0  ;;  %v174_v12 = vld [vmem:[#allocation2 + $0x9] sm:$0xff] }
  0x11   :  { %23 = vst.msk [vmem:[#allocation2 + $0x78] sm:$0x1] %vm18_vm2, %v938_v0 }
  0x12   :  { %24 = vst.msk [vmem:[#allocation2 + $0x90] sm:$0x1] %vm18_vm2, %v938_v0 }
  0x13   :  { %25 = vst.msk [vmem:[#allocation2 + $0xa8] sm:$0x1] %vm18_vm2, %v938_v0 }
  0x14   :  { %26 = vst.msk [vmem:[#allocation2 + $0xc0] sm:$0x1] %vm18_vm2, %v938_v0 }
  0x15   :  { %27 = vst.msk [vmem:[#allocation2 + $0xd8] sm:$0x1] %vm18_vm2, %v938_v0 }
  0x16   :  { %28 = vst.msk [vmem:[#allocation2 + $0xf0] sm:$0x1] %vm18_vm2, %v938_v0 }
  0x17   :  { %29 = vst.msk [vmem:[#allocation2 + $0x108] sm:$0x1] %vm18_vm2, %v938_v0 }
  0x18   :  { %30 = vst.msk [vmem:[#allocation2 + $0x120] sm:$0x1] %vm18_vm2, %v938_v0 }
  0x19   :  { %31 = vst.msk [vmem:[#allocation2 + $0x138] sm:$0x1] %vm18_vm2, %v938_v0 }
  0x1a   :  { %32 = vst.msk [vmem:[#allocation2 + $0x150] sm:$0x1] %vm18_vm2, %v938_v0 }
  0x1b   :  { %33 = vst.msk [vmem:[#allocation2 + $0x168] sm:$0x1] %vm18_vm2, %v938_v0 }
  0x1c   :  { %34 = vst.msk [vmem:[#allocation2 + $0x180] sm:$0x1] %vm18_vm2, %v938_v0 }
  0x1d   :  { %35 = vst.msk [vmem:[#allocation2 + $0x29] sm:$0x1] %vm18_vm2, %v938_v0 }
  0x1e   :  { %36 = vst.msk [vmem:[#allocation2 + $0x41] sm:$0x1] %vm18_vm2, %v938_v0 }
  0x1f   :  { %37 = vst.msk [vmem:[#allocation2 + $0x59] sm:$0x1] %vm18_vm2, %v938_v0 }
  0x20   :  { %38 = vst.msk [vmem:[#allocation2 + $0x71] sm:$0x1] %vm18_vm2, %v938_v0 }
  0x21   :  { %39 = vst.msk [vmem:[#allocation2 + $0x89] sm:$0x1] %vm18_vm2, %v938_v0 }
  0x22   :  { %40 = vst.msk [vmem:[#allocation2 + $0xa1] sm:$0x1] %vm18_vm2, %v938_v0 }
  0x23   :  { %41 = vst.msk [vmem:[#allocation2 + $0xb9] sm:$0x1] %vm18_vm2, %v938_v0 }
  0x24   :  { %42 = vst.msk [vmem:[#allocation2 + $0xd1] sm:$0x1] %vm18_vm2, %v938_v0 }
  0x25   :  { %43 = vst.msk [vmem:[#allocation2 + $0xe9] sm:$0x1] %vm18_vm2, %v938_v0 }
  0x26   :  { %44 = vst.msk [vmem:[#allocation2 + $0x101] sm:$0x1] %vm18_vm2, %v938_v0 }
  0x27   :  { %45 = vst.msk [vmem:[#allocation2 + $0x119] sm:$0x1] %vm18_vm2, %v938_v0 }
  0x28   :  { %46 = vst.msk [vmem:[#allocation2 + $0x131] sm:$0x1] %vm18_vm2, %v938_v0 }
  0x29   :  { %47 = vst.msk [vmem:[#allocation2 + $0x149] sm:$0x1] %vm18_vm2, %v938_v0 }
  0x2a   :  { %48 = vst.msk [vmem:[#allocation2 + $0x161] sm:$0x1] %vm18_vm2, %v938_v0 }
  0x2b   :  { %49 = vst.msk [vmem:[#allocation2 + $0x179] sm:$0x1] %vm18_vm2, %v938_v0 }
  0x2c   :  { %50 = vst.msk [vmem:[#allocation2 + $0x191] sm:$0x1] %vm18_vm2, %v938_v0 }
  0x2d   :  { %59 = vst.msk [vmem:[#allocation3 + $0x18] sm:$0x1] %vm18_vm2, %v938_v0 }
  0x2e   :  { %60 = vst.msk [vmem:[#allocation3 + $0x30] sm:$0x1] %vm18_vm2, %v938_v0 }
  0x2f   :  { %61 = vst.msk [vmem:[#allocation3 + $0x48] sm:$0x1] %vm18_vm2, %v938_v0 }
  0x30   :  { %62 = vst.msk [vmem:[#allocation3 + $0x60] sm:$0x1] %vm18_vm2, %v938_v0 }
  0x31   :  { %63 = vst.msk [vmem:[#allocation3 + $0x78] sm:$0x1] %vm18_vm2, %v938_v0 }
  0x32   :  { %64 = vst.msk [vmem:[#allocation3 + $0x90] sm:$0x1] %vm18_vm2, %v938_v0 }
  0x33   :  { %65 = vst.msk [vmem:[#allocation3 + $0xa8] sm:$0x1] %vm18_vm2, %v938_v0 }
  0x34   :  { %66 = vst.msk [vmem:[#allocation3 + $0xc0] sm:$0x1] %vm18_vm2, %v938_v0 }
  0x35   :  { %67 = vst.msk [vmem:[#allocation3 + $0xd8] sm:$0x1] %vm18_vm2, %v938_v0 }
  0x36   :  { %68 = vst.msk [vmem:[#allocation3 + $0xf0] sm:$0x1] %vm18_vm2, %v938_v0 }
  0x37   :  { %69 = vst.msk [vmem:[#allocation3 + $0x108] sm:$0x1] %vm18_vm2, %v938_v0 }
  0x38   :  { %70 = vst.msk [vmem:[#allocation3 + $0x120] sm:$0x1] %vm18_vm2, %v938_v0 }
  0x39   :  { %71 = vst.msk [vmem:[#allocation3 + $0x138] sm:$0x1] %vm18_vm2, %v938_v0 }
  0x3a   :  { %72 = vst.msk [vmem:[#allocation3 + $0x150] sm:$0x1] %vm18_vm2, %v938_v0 }
  0x3b   :  { %73 = vst.msk [vmem:[#allocation3 + $0x168] sm:$0x1] %vm18_vm2, %v938_v0 }
  0x3c   :  { %74 = vst.msk [vmem:[#allocation3 + $0x180] sm:$0x1] %vm18_vm2, %v938_v0 }
  0x3d   :  { %75 = vst.msk [vmem:[#allocation3 + $0x29] sm:$0x1] %vm18_vm2, %v938_v0 }
  0x3e   :  { %76 = vst.msk [vmem:[#allocation3 + $0x41] sm:$0x1] %vm18_vm2, %v938_v0 }
  0x3f   :  { %77 = vst.msk [vmem:[#allocation3 + $0x59] sm:$0x1] %vm18_vm2, %v938_v0 }
  0x40   :  { %78 = vst.msk [vmem:[#allocation3 + $0x71] sm:$0x1] %vm18_vm2, %v938_v0 }
  0x41   :  { %79 = vst.msk [vmem:[#allocation3 + $0x89] sm:$0x1] %vm18_vm2, %v938_v0 }
  0x42   :  { %80 = vst.msk [vmem:[#allocation3 + $0xa1] sm:$0x1] %vm18_vm2, %v938_v0 }
  0x43   :  { %81 = vst.msk [vmem:[#allocation3 + $0xb9] sm:$0x1] %vm18_vm2, %v938_v0 }
  0x44   :  { %82 = vst.msk [vmem:[#allocation3 + $0xd1] sm:$0x1] %vm18_vm2, %v938_v0 }
  0x45   :  { %83 = vst.msk [vmem:[#allocation3 + $0xe9] sm:$0x1] %vm18_vm2, %v938_v0 }
  0x46   :  { %84 = vst.msk [vmem:[#allocation3 + $0x101] sm:$0x1] %vm18_vm2, %v938_v0 }
  0x47   :  { %85 = vst.msk [vmem:[#allocation3 + $0x119] sm:$0x1] %vm18_vm2, %v938_v0 }
  0x48   :  { %86 = vst.msk [vmem:[#allocation3 + $0x131] sm:$0x1] %vm18_vm2, %v938_v0 }
  0x49   :  { %87 = vst.msk [vmem:[#allocation3 + $0x149] sm:$0x1] %vm18_vm2, %v938_v0 }
  0x4a   :  { %88 = vst.msk [vmem:[#allocation3 + $0x161] sm:$0x1] %vm18_vm2, %v938_v0 }
  0x4b   :  { %89 = vst.msk [vmem:[#allocation3 + $0x179] sm:$0x1] %vm18_vm2, %v938_v0 }
  0x4c   :  { %90 = vst.msk [vmem:[#allocation3 + $0x191] sm:$0x1] %vm18_vm2, %v938_v0 }
  0x4d   :  { %107 = vst.msk [vmem:[#allocation2 + $0x19] sm:$0xff] %vm8_vm0, %v91_v1 }
  0x4e   :  { %108 = vst.msk [vmem:[#allocation2 + $0x21] sm:$0xff] %vm8_vm0, %v92_v2 }
  0x4f   :  { %109 = vst.msk [vmem:[#allocation2 + $0x31] sm:$0xff] %vm8_vm0, %v93_v3  ;;  %v909_v3 = vld [vmem:[%s1643_s0 + $0xa0] sm:$0xff] }
  0x50   :  { %110 = vst.msk [vmem:[#allocation2 + $0x39] sm:$0xff] %vm8_vm0, %v94_v4 }
  0x51   :  { %111 = vst.msk [vmem:[#allocation2 + $0x49] sm:$0xff] %vm8_vm0, %v95_v5 }
  0x52   :  { %112 = vst.msk [vmem:[#allocation2 + $0x51] sm:$0xff] %vm8_vm0, %v96_v6 }
  0x53   :  { %113 = vst.msk [vmem:[#allocation2 + $0x61] sm:$0xff] %vm8_vm0, %v97_v7 }
  0x54   :  { %114 = vst.msk [vmem:[#allocation2 + $0x69] sm:$0xff] %vm8_vm0, %v98_v8  ;;  %v157_v14 = vld [vmem:[#allocation2 + $0x19] sm:$0xff] }
  0x55   :  { %115 = vst.msk [vmem:[#allocation2 + $0x79] sm:$0xff] %vm8_vm0, %v99_v9  ;;  %v238_v16 = vmul.f32 %v173_v10, %v157_v14  ;;  %v158_v17 = vld [vmem:[#allocation2 + $0x21] sm:$0xff]  ;;  %v206_v28 = vld [vmem:[#allocation2 + $0x18] sm:$0xff] }
  0x56   :  { %116 = vst.msk [vmem:[#allocation2 + $0x81] sm:$0xff] %vm8_vm0, %v100_v11  ;;  %v1149_v20 = vld [vmem:[#allocation2 + $0x31] sm:$0xff]  ;;  %v239_v21 = vmul.f32 %v174_v12, %v158_v17  ;;  %v207_v34 = vld [vmem:[#allocation2 + $0x20] sm:$0xff]  ;;  %v910_v10 = vld [vmem:[%s1643_s0 + $0xa8] sm:$0xff] }
  0x57   :  { %117 = vst.msk [vmem:[#allocation2 + $0x91] sm:$0xff] %vm8_vm0, %v101_v13  ;;  %v254_v24 = vmul.f32 %v238_v16, %v1149_v20  ;;  %v1159_v25 = vld [vmem:[#allocation2 + $0x39] sm:$0xff]  ;;  %v240_v26 = vmul.f32 %v1149_v20, %v157_v14  ;;  %v208_v41 = vld [vmem:[#allocation2 + $0x30] sm:$0xff]  ;;  %v223_v47 = vld [vmem:[#allocation2 + $0x22] sm:$0xff] }
  0x58   :  { %118 = vst.msk [vmem:[#allocation2 + $0x99] sm:$0xff] %vm8_vm0, %v102_v15  ;;  %v255_v29 = vmul.f32 %v239_v21, %v1159_v25  ;;  %v1167_v30 = vld [vmem:[#allocation2 + $0x49] sm:$0xff]  ;;  %v241_v31 = vmul.f32 %v1159_v25, %v158_v17  ;;  %v222_v39 = vld [vmem:[#allocation2 + $0x1a] sm:$0xff]  ;;  %v224_v54 = vld [vmem:[#allocation2 + $0x32] sm:$0xff] }
  0x59   :  { %119 = vst.msk [vmem:[#allocation2 + $0xa9] sm:$0xff] %vm8_vm0, %v103_v18  ;;  %v270_v33 = vmul.f32 %v254_v24, %v206_v28  ;;  %v256_v35 = vmul.f32 %v240_v26, %v1167_v30  ;;  %v1175_v36 = vld [vmem:[#allocation2 + $0x51] sm:$0xff]  ;;  %v242_v37 = vmul.f32 %v1167_v30, %v1149_v20  ;;  %v210_v56 = vld [vmem:[#allocation2 + $0x48] sm:$0xff]  ;;  %v225_v62 = vld [vmem:[#allocation2 + $0x3a] sm:$0xff] }
  0x5a   :  { %120 = vst.msk [vmem:[#allocation2 + $0xb1] sm:$0xff] %vm8_vm0, %v104_v19  ;;  %v271_v40 = vmul.f32 %v255_v29, %v207_v34  ;;  %v257_v42 = vmul.f32 %v241_v31, %v1175_v36  ;;  %v1184_v43 = vld [vmem:[#allocation2 + $0x61] sm:$0xff]  ;;  %v243_v44 = vmul.f32 %v1175_v36, %v1159_v25  ;;  %v209_v49 = vld [vmem:[#allocation2 + $0x38] sm:$0xff]  ;;  %v211_v0 = vld [vmem:[#allocation2 + $0x50] sm:$0xff] }
  0x5b   :  { %121 = vst.msk [vmem:[#allocation2 + $0xc1] sm:$0xff] %vm8_vm0, %v105_v22  ;;  %v286_v46 = vmul.f32 %v270_v33, %v222_v39  ;;  %v272_v48 = vmul.f32 %v256_v35, %v208_v41  ;;  %v258_v50 = vmul.f32 %v242_v37, %v1184_v43  ;;  %v1193_v51 = vld [vmem:[#allocation2 + $0x69] sm:$0xff]  ;;  %v244_v52 = vmul.f32 %v1184_v43, %v1167_v30  ;;  %v212_v8 = vld [vmem:[#allocation2 + $0x60] sm:$0xff]  ;;  %v912_v24 = vld [vmem:[%s1643_s0 + $0xb8] sm:$0xff] }
  0x5c   :  { %122 = vst.msk [vmem:[#allocation2 + $0xc9] sm:$0xff] %vm8_vm0, %v106_v23  ;;  %v287_v53 = vmul.f32 %v271_v40, %v223_v47  ;;  %v273_v55 = vmul.f32 %v257_v42, %v209_v49  ;;  %v259_v57 = vmul.f32 %v243_v44, %v1193_v51  ;;  %v1199_v58 = vld [vmem:[#allocation2 + $0x79] sm:$0xff]  ;;  %v245_v59 = vmul.f32 %v1193_v51, %v1175_v36  ;;  %v226_v6 = vld [vmem:[#allocation2 + $0x4a] sm:$0xff]  ;;  %v228_v22 = vld [vmem:[#allocation2 + $0x62] sm:$0xff] }
  0x5d   :  { %141 = vst.msk [vmem:[#allocation2 + $0xd9] sm:$0xff] %vm8_vm0, %v905_v27  ;;  %v1204_v60 = vmul.f32 %v286_v46, %v157_v14  ;;  %v288_v61 = vmul.f32 %v272_v48, %v224_v54  ;;  %v274_v63 = vmul.f32 %v258_v50, %v210_v56  ;;  %v260_v1 = vmul.f32 %v244_v52, %v1199_v58  ;;  %v1207_v2 = vld [vmem:[#allocation2 + $0x81] sm:$0xff]  ;;  %v227_v14 = vld [vmem:[#allocation2 + $0x52] sm:$0xff]  ;;  %v229_v29 = vld [vmem:[#allocation2 + $0x6a] sm:$0xff] }
  0x5e   :  { %142 = vst.msk [vmem:[#allocation2 + $0xe1] sm:$0xff] %vm8_vm0, %v906_v32  ;;  %v1213_v4 = vmul.f32 %v287_v53, %v158_v17  ;;  %v289_v5 = vmul.f32 %v273_v55, %v225_v62  ;;  %v275_v7 = vmul.f32 %v259_v57, %v211_v0  ;;  %v261_v9 = vmul.f32 %v245_v59, %v1207_v2  ;;  %v213_v16 = vld [vmem:[#allocation2 + $0x68] sm:$0xff]  ;;  %v911_v17 = vld [vmem:[%s1643_s0 + $0xb0] sm:$0xff]  ;;  %v913_v32 = vld [vmem:[%s1643_s0 + $0xc0] sm:$0xff] }
  0x5f   :  { %143 = vst.msk [vmem:[#allocation2 + $0xf1] sm:$0xff] %vm8_vm0, %v907_v38  ;;  %v318_v11 = vsub.f32 1.0, %v1204_v60  ;;  %v1222_v12 = vmul.f32 %v288_v61, %v1149_v20  ;;  %v290_v13 = vmul.f32 %v274_v63, %v226_v6  ;;  %v276_v15 = vmul.f32 %v260_v1, %v212_v8  ;;  %v1232_v20 = vld [vmem:[#allocation2 + $0x91] sm:$0xff]  ;;  %v1244_v31 = vld [vmem:[#allocation2 + $0x99] sm:$0xff]  ;;  %v914_v33 = vld [vmem:[%s1643_s0 + $0xc8] sm:$0xff] }
  0x60   :  { %144 = vst.msk [vmem:[#allocation2 + $0xf9] sm:$0xff] %vm8_vm0, %v908_v45  ;;  %v319_v18 = vsub.f32 1.0, %v1213_v4  ;;  %v1230_v19 = vmul.f32 %v289_v5, %v1159_v25  ;;  %v291_v21 = vmul.f32 %v275_v7, %v227_v14  ;;  %v277_v23 = vmul.f32 %v261_v9, %v213_v16  ;;  %v1259_v38 = vld [vmem:[#allocation2 + $0xa9] sm:$0xff]  ;;  %v916_v40 = vld [vmem:[%s1643_s0 + $0xd8] sm:$0xff]  ;;  %v917_v46 = vld [vmem:[%s1643_s0 + $0xe0] sm:$0xff] }
  0x61   :  { %145 = vst.msk [vmem:[#allocation2 + $0x109] sm:$0xff] %vm8_vm0, %v909_v3  ;;  %v320_v26 = vsub.f32 1.0, %v1222_v12  ;;  %v1240_v27 = vmul.f32 %v290_v13, %v1167_v30  ;;  %v292_v28 = vmul.f32 %v276_v15, %v228_v22  ;;  %v246_v25 = vmul.f32 %v1199_v58, %v1184_v43  ;;  %v915_v39 = vld [vmem:[%s1643_s0 + $0xd0] sm:$0xff]  ;;  %v918_v53 = vld [vmem:[%s1643_s0 + $0xe8] sm:$0xff]  ;;  %v215_v56 = vld [vmem:[#allocation2 + $0x80] sm:$0xff] }
  0x62   :  { %146 = vst.msk [vmem:[#allocation2 + $0x111] sm:$0xff] %vm8_vm0, %v910_v10  ;;  %v321_v30 = vsub.f32 1.0, %v1230_v19  ;;  %v1255_v34 = vmul.f32 %v291_v21, %v1175_v36  ;;  %v293_v35 = vmul.f32 %v277_v23, %v229_v29  ;;  %v247_v37 = vmul.f32 %v1207_v2, %v1193_v51  ;;  %v1275_v45 = vld [vmem:[#allocation2 + $0xb1] sm:$0xff]  ;;  %v1288_v52 = vld [vmem:[#allocation2 + $0xc1] sm:$0xff] }
  0x63   :  { %147 = vst.msk [vmem:[#allocation2 + $0x121] sm:$0xff] %vm8_vm0, %v911_v17  ;;  %v322_v41 = vsub.f32 1.0, %v1240_v27  ;;  %v1270_v36 = vmul.f32 %v292_v28, %v1184_v43  ;;  %v262_v42 = vmul.f32 %v246_v25, %v1232_v20  ;;  %v248_v44 = vmul.f32 %v1232_v20, %v1199_v58  ;;  %v214_v43 = vld [vmem:[#allocation2 + $0x78] sm:$0xff]  ;;  %v1298_v59 = vld [vmem:[#allocation2 + $0xc9] sm:$0xff] }
  0x64   :  { %148 = vst.msk [vmem:[#allocation2 + $0x129] sm:$0xff] %vm8_vm0, %v912_v24  ;;  %v323_v47 = vsub.f32 1.0, %v1255_v34  ;;  %v1283_v48 = vmul.f32 %v293_v35, %v1193_v51  ;;  %v263_v49 = vmul.f32 %v247_v37, %v1244_v31  ;;  %v249_v50 = vmul.f32 %v1244_v31, %v1207_v2  ;;  %v919_v61 = vld [vmem:[%s1643_s0 + $0xf0] sm:$0xff]  ;;  %v230_v63 = vld [vmem:[#allocation2 + $0x7a] sm:$0xff]  ;;  %v231_v8 = vld [vmem:[#allocation2 + $0x82] sm:$0xff] }
  0x65   :  { %149 = vst.msk [vmem:[#allocation2 + $0x139] sm:$0xff] %vm8_vm0, %v913_v32  ;;  %v324_v54 = vsub.f32 1.0, %v1270_v36  ;;  %v278_v55 = vmul.f32 %v262_v42, %v214_v43  ;;  %v264_v51 = vmul.f32 %v248_v44, %v1259_v38  ;;  %v250_v57 = vmul.f32 %v1259_v38, %v1232_v20  ;;  %v216_v1 = vld [vmem:[#allocation2 + $0x90] sm:$0xff]  ;;  %v920_v6 = vld [vmem:[%s1643_s0 + $0xf8] sm:$0xff]  ;;  %v218_v21 = vld [vmem:[#allocation2 + $0xa8] sm:$0xff] }
  0x66   :  { %150 = vst.msk [vmem:[#allocation2 + $0x141] sm:$0xff] %vm8_vm0, %v914_v33  ;;  %v325_v62 = vsub.f32 1.0, %v1283_v48  ;;  %v279_v0 = vmul.f32 %v263_v49, %v215_v56  ;;  %v265_v3 = vmul.f32 %v249_v50, %v1275_v45  ;;  %v251_v5 = vmul.f32 %v1275_v45, %v1244_v31  ;;  %v217_v10 = vld [vmem:[#allocation2 + $0x98] sm:$0xff]  ;;  %v219_v33 = vld [vmem:[#allocation2 + $0xb0] sm:$0xff]  ;;  %v1326_v37 = vld [vmem:[#allocation2 + $0xe1] sm:$0xff] }
  0x67   :  { %151 = vst.msk [vmem:[#allocation2 + $0x151] sm:$0xff] %vm8_vm0, %v915_v39  ;;  %v294_v7 = vmul.f32 %v278_v55, %v230_v63  ;;  %v280_v9 = vmul.f32 %v264_v51, %v216_v1  ;;  %v266_v13 = vmul.f32 %v250_v57, %v1288_v52  ;;  %v252_v14 = vmul.f32 %v1288_v52, %v1259_v38  ;;  %v232_v16 = vld [vmem:[#allocation2 + $0x92] sm:$0xff]  ;;  %v233_v25 = vld [vmem:[#allocation2 + $0x9a] sm:$0xff]  ;;  %v234_v42 = vld [vmem:[#allocation2 + $0xaa] sm:$0xff] }
  0x68   :  { %152 = vst.msk [vmem:[#allocation2 + $0x159] sm:$0xff] %vm8_vm0, %v916_v40  ;;  %v295_v15 = vmul.f32 %v279_v0, %v231_v8  ;;  %v281_v17 = vmul.f32 %v265_v3, %v217_v10  ;;  %v267_v22 = vmul.f32 %v251_v5, %v1298_v59  ;;  %v1317_v23 = vld [vmem:[#allocation2 + $0xd9] sm:$0xff]  ;;  %v253_v24 = vmul.f32 %v1298_v59, %v1275_v45  ;;  %v236_v63 = vld [vmem:[#allocation2 + $0xc2] sm:$0xff]  ;;  %v237_v5 = vld [vmem:[#allocation2 + $0xca] sm:$0xff] }
  0x69   :  { %153 = vst.msk [vmem:[#allocation2 + $0x169] sm:$0xff] %vm8_vm0, %v917_v46  ;;  %v1323_v28 = vmul.f32 %v294_v7, %v1199_v58  ;;  %v296_v29 = vmul.f32 %v280_v9, %v232_v16  ;;  %v282_v32 = vmul.f32 %v266_v13, %v218_v21  ;;  %v268_v35 = vmul.f32 %v252_v14, %v1317_v23  ;;  %v220_v46 = vld [vmem:[#allocation2 + $0xc0] sm:$0xff]  ;;  %v235_v55 = vld [vmem:[#allocation2 + $0xb2] sm:$0xff]  ;;  %v1365_v8 = vld [vmem:[#allocation2 + $0x109] sm:$0xff] }
  0x6a   :  { %154 = vst.msk [vmem:[#allocation2 + $0x171] sm:$0xff] %vm8_vm0, %v918_v53  ;;  %v1330_v39 = vmul.f32 %v295_v15, %v1207_v2  ;;  %v297_v40 = vmul.f32 %v281_v17, %v233_v25  ;;  %v283_v44 = vmul.f32 %v267_v22, %v219_v33  ;;  %v269_v58 = vmul.f32 %v253_v24, %v1326_v37  ;;  %v221_v53 = vld [vmem:[#allocation2 + $0xc8] sm:$0xff]  ;;  %v1377_v10 = vld [vmem:[#allocation2 + $0x111] sm:$0xff]  ;;  %v401_v16 = vld [vmem:[#allocation2 + $0xe0] sm:$0xff] }
  0x6b   :  { %155 = vst.msk [vmem:[#allocation2 + $0x181] sm:$0xff] %vm8_vm0, %v919_v61  ;;  %v326_v43 = vsub.f32 1.0, %v1323_v28  ;;  %v1336_v49 = vmul.f32 %v296_v29, %v1232_v20  ;;  %v298_v50 = vmul.f32 %v282_v32, %v234_v42  ;;  %v284_v56 = vmul.f32 %v268_v35, %v220_v46  ;;  %v1343_v61 = vld [vmem:[#allocation2 + $0xf1] sm:$0xff]  ;;  %v1389_v15 = vld [vmem:[#allocation2 + $0x121] sm:$0xff]  ;;  %v1398_v21 = vld [vmem:[#allocation2 + $0x129] sm:$0xff] }
  0x6c   :  { %156 = vst.msk [vmem:[#allocation2 + $0x189] sm:$0xff] %vm8_vm0, %v920_v6  ;;  %v327_v2 = vsub.f32 1.0, %v1330_v39  ;;  %v1341_v51 = vmul.f32 %v297_v40, %v1244_v31  ;;  %v299_v57 = vmul.f32 %v283_v44, %v235_v55  ;;  %v285_v0 = vmul.f32 %v269_v58, %v221_v53  ;;  %v1354_v6 = vld [vmem:[#allocation2 + $0xf9] sm:$0xff]  ;;  %v417_v33 = vld [vmem:[#allocation2 + $0xe2] sm:$0xff]  ;;  %v405_v53 = vld [vmem:[#allocation2 + $0x110] sm:$0xff] }
  0x6d   :  { %334 = vst.msk [vmem:[#allocation3 + $0x19] sm:$0xff] %vm8_vm0, %v318_v11  ;;  %v328_v20 = vsub.f32 1.0, %v1336_v49  ;;  %v1350_v1 = vmul.f32 %v298_v50, %v1259_v38  ;;  %v300_v3 = vmul.f32 %v284_v56, %v236_v63  ;;  %v432_v31 = vmul.f32 %v1317_v23, %v1288_v52  ;;  %v400_v13 = vld [vmem:[#allocation2 + $0xd8] sm:$0xff]  ;;  %v404_v58 = vld [vmem:[#allocation2 + $0x108] sm:$0xff] }
  0x6e   :  { %335 = vst.msk [vmem:[#allocation3 + $0x21] sm:$0xff] %vm8_vm0, %v319_v18  ;;  %v329_v60 = vsub.f32 1.0, %v1341_v51  ;;  %v1361_v11 = vmul.f32 %v299_v57, %v1275_v45  ;;  %v301_v7 = vmul.f32 %v285_v0, %v237_v5  ;;  %v433_v38 = vmul.f32 %v1326_v37, %v1298_v59  ;;  %v416_v27 = vld [vmem:[#allocation2 + $0xda] sm:$0xff]  ;;  %v418_v44 = vld [vmem:[#allocation2 + $0xf2] sm:$0xff]  ;;  %v420_v28 = vld [vmem:[#allocation2 + $0x10a] sm:$0xff] }
  0x6f   :  { %336 = vst.msk [vmem:[#allocation3 + $0x31] sm:$0xff] %vm8_vm0, %v320_v26  ;;  %v330_v9 = vsub.f32 1.0, %v1350_v1  ;;  %v1372_v4 = vmul.f32 %v300_v3, %v1288_v52  ;;  %v448_v18 = vmul.f32 %v432_v31, %v1343_v61  ;;  %v434_v45 = vmul.f32 %v1343_v61, %v1317_v23  ;;  %v403_v34 = vld [vmem:[#allocation2 + $0xf8] sm:$0xff]  ;;  %v1426_v63 = vld [vmem:[#allocation2 + $0x141] sm:$0xff] }
  0x70   :  { %337 = vst.msk [vmem:[#allocation3 + $0x39] sm:$0xff] %vm8_vm0, %v321_v30  ;;  %v331_v12 = vsub.f32 1.0, %v1361_v11  ;;  %v1384_v26 = vmul.f32 %v301_v7, %v1298_v59  ;;  %v449_v52 = vmul.f32 %v433_v38, %v1354_v6  ;;  %v435_v14 = vmul.f32 %v1354_v6, %v1326_v37  ;;  %v419_v56 = vld [vmem:[#allocation2 + $0xfa] sm:$0xff]  ;;  %v1441_v49 = vld [vmem:[#allocation2 + $0x151] sm:$0xff] }
  0x71   :  { %338 = vst.msk [vmem:[#allocation3 + $0x49] sm:$0xff] %vm8_vm0, %v322_v41  ;;  %v332_v19 = vsub.f32 1.0, %v1372_v4  ;;  %v464_v30 = vmul.f32 %v448_v18, %v400_v13  ;;  %v450_v17 = vmul.f32 %v434_v45, %v1365_v8  ;;  %v436_v59 = vmul.f32 %v1365_v8, %v1343_v61  ;;  %v402_v41 = vld [vmem:[#allocation2 + $0xf0] sm:$0xff]  ;;  %v407_v45 = vld [vmem:[#allocation2 + $0x128] sm:$0xff]  ;;  %v408_v4 = vld [vmem:[#allocation2 + $0x138] sm:$0xff] }
  0x72   :  { %339 = vst.msk [vmem:[#allocation3 + $0x51] sm:$0xff] %vm8_vm0, %v323_v47  ;;  %v333_v22 = vsub.f32 1.0, %v1384_v26  ;;  %v465_v24 = vmul.f32 %v449_v52, %v401_v16  ;;  %v451_v29 = vmul.f32 %v435_v14, %v1377_v10  ;;  %v437_v25 = vmul.f32 %v1377_v10, %v1354_v6  ;;  %v421_v18 = vld [vmem:[#allocation2 + $0x112] sm:$0xff]  ;;  %v422_v52 = vld [vmem:[#allocation2 + $0x122] sm:$0xff]  ;;  %v423_v16 = vld [vmem:[#allocation2 + $0x12a] sm:$0xff] }
  0x73   :  { %340 = vst.msk [vmem:[#allocation3 + $0x61] sm:$0xff] %vm8_vm0, %v324_v54  ;;  %v480_v32 = vmul.f32 %v464_v30, %v416_v27  ;;  %v466_v35 = vmul.f32 %v450_v17, %v402_v41  ;;  %v452_v47 = vmul.f32 %v436_v59, %v1389_v15  ;;  %v438_v40 = vmul.f32 %v1389_v15, %v1365_v8  ;;  %v1417_v54 = vld [vmem:[#allocation2 + $0x139] sm:$0xff]  ;;  %v1457_v59 = vld [vmem:[#allocation2 + $0x169] sm:$0xff] }
  0x74   :  { %341 = vst.msk [vmem:[#allocation3 + $0x69] sm:$0xff] %vm8_vm0, %v325_v62  ;;  %v481_v42 = vmul.f32 %v465_v24, %v417_v33  ;;  %v467_v46 = vmul.f32 %v451_v29, %v403_v34  ;;  %v453_v36 = vmul.f32 %v437_v25, %v1398_v21  ;;  %v439_v50 = vmul.f32 %v1398_v21, %v1377_v10  ;;  %v1466_v24 = vld [vmem:[#allocation2 + $0x171] sm:$0xff]  ;;  %v1475_v29 = vld [vmem:[#allocation2 + $0x181] sm:$0xff] }
  0x75   :  { %342 = vst.msk [vmem:[#allocation3 + $0x79] sm:$0xff] %vm8_vm0, %v326_v43  ;;  %v496_v55 = vmul.f32 %v480_v32, %v1317_v23  ;;  %v482_v48 = vmul.f32 %v466_v35, %v418_v44  ;;  %v468_v62 = vmul.f32 %v452_v47, %v404_v58  ;;  %v454_v57 = vmul.f32 %v438_v40, %v1417_v54  ;;  %v406_v43 = vld [vmem:[#allocation2 + $0x120] sm:$0xff]  ;;  %v1481_v35 = vld [vmem:[#allocation2 + $0x189] sm:$0xff] }
  0x76   :  { %343 = vst.msk [vmem:[#allocation3 + $0x81] sm:$0xff] %vm8_vm0, %v327_v2  ;;  %v497_v0 = vmul.f32 %v481_v42, %v1326_v37  ;;  %v483_v3 = vmul.f32 %v467_v46, %v419_v56  ;;  %v469_v5 = vmul.f32 %v453_v36, %v405_v53  ;;  %v455_v23 = vmul.f32 %v439_v50, %v1426_v63  ;;  %v409_v33 = vld [vmem:[#allocation2 + $0x140] sm:$0xff]  ;;  %v410_v40 = vld [vmem:[#allocation2 + $0x150] sm:$0xff] }
  0x77   :  { %344 = vst.msk [vmem:[#allocation3 + $0x91] sm:$0xff] %vm8_vm0, %v328_v20  ;;  %v512_v31 = vsub.f32 1.0, %v496_v55  ;;  %v498_v7 = vmul.f32 %v482_v48, %v1343_v61  ;;  %v484_v38 = vmul.f32 %v468_v62, %v420_v28  ;;  %v470_v39 = vmul.f32 %v454_v57, %v406_v43  ;;  %v424_v34 = vld [vmem:[#allocation2 + $0x13a] sm:$0xff]  ;;  %v425_v36 = vld [vmem:[#allocation2 + $0x142] sm:$0xff]  ;;  %v426_v57 = vld [vmem:[#allocation2 + $0x152] sm:$0xff] }
  0x78   :  { %345 = vst.msk [vmem:[#allocation3 + $0x99] sm:$0xff] %vm8_vm0, %v329_v60  ;;  %v513_v37 = vsub.f32 1.0, %v497_v0  ;;  %v499_v2 = vmul.f32 %v483_v3, %v1354_v6  ;;  %v485_v13 = vmul.f32 %v469_v5, %v421_v18  ;;  %v471_v14 = vmul.f32 %v455_v23, %v407_v45  ;;  %v1449_v60 = vld [vmem:[#allocation2 + $0x159] sm:$0xff]  ;;  %v399_v62 = vld [vmem:[#allocation2 + $0x1a1] sm:$0xff]  ;;  %v413_v18 = vld [vmem:[#allocation2 + $0x170] sm:$0xff] }
  0x79   :  { %346 = vst.msk [vmem:[#allocation3 + $0xa9] sm:$0xff] %vm8_vm0, %v330_v9  ;;  %v514_v61 = vsub.f32 1.0, %v498_v7  ;;  %v500_v20 = vmul.f32 %v484_v38, %v1365_v8  ;;  %v486_v30 = vmul.f32 %v470_v39, %v422_v52  ;;  %v440_v51 = vmul.f32 %v1417_v54, %v1389_v15  ;;  %v398_v46 = vld [vmem:[#allocation2 + $0x199] sm:$0xff]  ;;  %v412_v28 = vld [vmem:[#allocation2 + $0x168] sm:$0xff] }
  0x7a   :  { %347 = vst.msk [vmem:[#allocation3 + $0xb1] sm:$0xff] %vm8_vm0, %v331_v12  ;;  %v515_v6 = vsub.f32 1.0, %v499_v2  ;;  %v501_v17 = vmul.f32 %v485_v13, %v1377_v10  ;;  %v487_v1 = vmul.f32 %v471_v14, %v423_v16  ;;  %v441_v9 = vmul.f32 %v1426_v63, %v1398_v21  ;;  %v411_v55 = vld [vmem:[#allocation2 + $0x158] sm:$0xff]  ;;  %v428_v7 = vld [vmem:[#allocation2 + $0x16a] sm:$0xff]  ;;  %v414_v52 = vld [vmem:[#allocation2 + $0x180] sm:$0xff] }
  0x7b   :  { %348 = vst.msk [vmem:[#allocation3 + $0xc1] sm:$0xff] %vm8_vm0, %v332_v19  ;;  %v516_v8 = vsub.f32 1.0, %v500_v20  ;;  %v502_v27 = vmul.f32 %v486_v30, %v1389_v15  ;;  %v456_v11 = vmul.f32 %v440_v51, %v1441_v49  ;;  %v442_v12 = vmul.f32 %v1441_v49, %v1417_v54  ;;  %v427_v0 = vld [vmem:[#allocation2 + $0x15a] sm:$0xff]  ;;  %v429_v39 = vld [vmem:[#allocation2 + $0x172] sm:$0xff] }
  0x7c   :  { %349 = vst.msk [vmem:[#allocation3 + $0xc9] sm:$0xff] %vm8_vm0, %v333_v22  ;;  %v517_v10 = vsub.f32 1.0, %v501_v17  ;;  %v503_v41 = vmul.f32 %v487_v1, %v1398_v21  ;;  %v457_v19 = vmul.f32 %v441_v9, %v1449_v60  ;;  %v443_v15 = vmul.f32 %v1449_v60, %v1426_v63  ;;  %v561_v20 = vld [vmem:[#allocation3 + $0x1] sm:$0xff]  ;;  %v562_v1 = vld [vmem:[#allocation3 + $0x9] sm:$0xff] }
  0x7d   :  { %529 = vst.msk [vmem:[#allocation3 + $0xd9] sm:$0xff] %vm8_vm0, %v512_v31  ;;  %v518_v25 = vsub.f32 1.0, %v502_v27  ;;  %v472_v32 = vmul.f32 %v456_v11, %v408_v4  ;;  %v458_v26 = vmul.f32 %v442_v12, %v1457_v59  ;;  %v444_v22 = vmul.f32 %v1457_v59, %v1441_v49  ;;  %v546_v17 = vld [vmem:[#allocation3 + $0x21] sm:$0xff]  ;;  %v430_v27 = vld [vmem:[#allocation2 + $0x182] sm:$0xff] }
  0x7e   :  { %530 = vst.msk [vmem:[#allocation3 + $0xe1] sm:$0xff] %vm8_vm0, %v513_v37  ;;  %v519_v21 = vsub.f32 1.0, %v503_v41  ;;  %v473_v47 = vmul.f32 %v457_v19, %v409_v33  ;;  %v459_v42 = vmul.f32 %v443_v15, %v1466_v24  ;;  %v445_v44 = vmul.f32 %v1466_v24, %v1449_v60  ;;  %v578_v12 = vld [vmem:[#allocation3 + $0x31] sm:$0xff]  ;;  %v431_v4 = vld [vmem:[#allocation2 + $0x18a] sm:$0xff] }
  0x7f   :  { %531 = vst.msk [vmem:[#allocation3 + $0xf1] sm:$0xff] %vm8_vm0, %v514_v61  ;;  %v488_v58 = vmul.f32 %v472_v32, %v424_v34  ;;  %v474_v50 = vmul.f32 %v458_v26, %v410_v40  ;;  %v460_v48 = vmul.f32 %v444_v22, %v1475_v29  ;;  %v446_v56 = vmul.f32 %v1475_v29, %v1457_v59  ;;  %v545_v61 = vld [vmem:[#allocation3 + $0x19] sm:$0xff]  ;;  %v580_v26 = vld [vmem:[#allocation3 + $0x49] sm:$0xff] }
  0x80   :  { %532 = vst.msk [vmem:[#allocation3 + $0xf9] sm:$0xff] %vm8_vm0, %v515_v6  ;;  %v489_v53 = vmul.f32 %v473_v47, %v425_v36  ;;  %v475_v3 = vmul.f32 %v459_v42, %v411_v55  ;;  %v461_v5 = vmul.f32 %v445_v44, %v1481_v35  ;;  %v447_v43 = vmul.f32 %v1481_v35, %v1466_v24  ;;  %v415_v6 = vld [vmem:[#allocation2 + $0x188] sm:$0xff]  ;;  %v595_v55 = vld [vmem:[#allocation3 + $0x20] sm:$0xff] }
  0x81   :  { %533 = vst.msk [vmem:[#allocation3 + $0x109] sm:$0xff] %vm8_vm0, %v516_v8  ;;  %v504_v23 = vmul.f32 %v488_v58, %v1417_v54  ;;  %v490_v31 = vmul.f32 %v474_v50, %v426_v57  ;;  %v476_v38 = vmul.f32 %v460_v48, %v412_v28  ;;  %v462_v45 = vmul.f32 %v446_v56, %v398_v46  ;;  %v579_v15 = vld [vmem:[#allocation3 + $0x39] sm:$0xff] }
  0x82   :  { %534 = vst.msk [vmem:[#allocation3 + $0x111] sm:$0xff] %vm8_vm0, %v517_v10  ;;  %v505_v37 = vmul.f32 %v489_v53, %v1426_v63  ;;  %v491_v2 = vmul.f32 %v475_v3, %v427_v0  ;;  %v477_v13 = vmul.f32 %v461_v5, %v413_v18  ;;  %v463_v14 = vmul.f32 %v447_v43, %v399_v62  ;;  %v594_v44 = vld [vmem:[#allocation3 + $0x18] sm:$0xff]  ;;  %v596_v0 = vld [vmem:[#allocation3 + $0x30] sm:$0xff]  ;;  %v611_v5 = vld [vmem:[#allocation3 + $0x22] sm:$0xff] }
  0x83   :  { %535 = vst.msk [vmem:[#allocation3 + $0x121] sm:$0xff] %vm8_vm0, %v518_v25  ;;  %v520_v30 = vsub.f32 1.0, %v504_v23  ;;  %v506_v54 = vmul.f32 %v490_v31, %v1441_v49  ;;  %v492_v16 = vmul.f32 %v476_v38, %v428_v7  ;;  %v478_v51 = vmul.f32 %v462_v45, %v414_v52  ;;  %v610_v53 = vld [vmem:[#allocation3 + $0x1a] sm:$0xff]  ;;  %v612_v18 = vld [vmem:[#allocation3 + $0x32] sm:$0xff]  ;;  %v598_v45 = vld [vmem:[#allocation3 + $0x48] sm:$0xff] }
  0x84   :  { %536 = vst.msk [vmem:[#allocation3 + $0x129] sm:$0xff] %vm8_vm0, %v519_v21  ;;  %v521_v9 = vsub.f32 1.0, %v505_v37  ;;  %v507_v63 = vmul.f32 %v491_v2, %v1449_v60  ;;  %v493_v8 = vmul.f32 %v477_v13, %v429_v39  ;;  %v479_v11 = vmul.f32 %v463_v14, %v415_v6  ;;  %v597_v23 = vld [vmem:[#allocation3 + $0x38] sm:$0xff] }
  0x85   :  { %537 = vst.msk [vmem:[#allocation3 + $0x139] sm:$0xff] %vm8_vm0, %v520_v30  ;;  %v522_v10 = vsub.f32 1.0, %v506_v54  ;;  %v508_v41 = vmul.f32 %v492_v16, %v1457_v59  ;;  %v494_v49 = vmul.f32 %v478_v51, %v430_v27  ;;  %v626_v19 = vmul.f32 %v561_v20, %v545_v61  ;;  %v581_v59 = vld [vmem:[#allocation3 + $0x51] sm:$0xff]  ;;  %v584_v2 = vld [vmem:[#allocation3 + $0x79] sm:$0xff]  ;;  %v585_v16 = vld [vmem:[#allocation3 + $0x81] sm:$0xff] }
  0x86   :  { %538 = vst.msk [vmem:[#allocation3 + $0x141] sm:$0xff] %vm8_vm0, %v521_v9  ;;  %v523_v25 = vsub.f32 1.0, %v507_v63  ;;  %v509_v32 = vmul.f32 %v493_v8, %v1466_v24  ;;  %v495_v33 = vmul.f32 %v479_v11, %v431_v4  ;;  %v627_v60 = vmul.f32 %v562_v1, %v546_v17  ;;  %v582_v24 = vld [vmem:[#allocation3 + $0x61] sm:$0xff]  ;;  %v599_v30 = vld [vmem:[#allocation3 + $0x50] sm:$0xff]  ;;  %v587_v4 = vld [vmem:[#allocation3 + $0x99] sm:$0xff] }
  0x87   :  { %539 = vst.msk [vmem:[#allocation3 + $0x151] sm:$0xff] %vm8_vm0, %v522_v10  ;;  %v524_v22 = vsub.f32 1.0, %v508_v41  ;;  %v510_v21 = vmul.f32 %v494_v49, %v1475_v29  ;;  %v642_v34 = vmul.f32 %v626_v19, %v578_v12  ;;  %v628_v47 = vmul.f32 %v578_v12, %v545_v61  ;;  %v583_v29 = vld [vmem:[#allocation3 + $0x69] sm:$0xff]  ;;  %v613_v61 = vld [vmem:[#allocation3 + $0x3a] sm:$0xff]  ;;  %v586_v8 = vld [vmem:[#allocation3 + $0x91] sm:$0xff] }
  0x88   :  { %540 = vst.msk [vmem:[#allocation3 + $0x159] sm:$0xff] %vm8_vm0, %v523_v25  ;;  %v525_v40 = vsub.f32 1.0, %v509_v32  ;;  %v511_v42 = vmul.f32 %v495_v33, %v1481_v35  ;;  %v643_v46 = vmul.f32 %v627_v60, %v579_v15  ;;  %v629_v58 = vmul.f32 %v579_v15, %v546_v17  ;;  %v614_v17 = vld [vmem:[#allocation3 + $0x4a] sm:$0xff]  ;;  %v600_v9 = vld [vmem:[#allocation3 + $0x60] sm:$0xff] }
  0x89   :  { %541 = vst.msk [vmem:[#allocation3 + $0x169] sm:$0xff] %vm8_vm0, %v524_v22  ;;  %v526_v36 = vsub.f32 1.0, %v510_v21  ;;  %v658_v50 = vmul.f32 %v642_v34, %v594_v44  ;;  %v644_v48 = vmul.f32 %v628_v47, %v580_v26  ;;  %v630_v56 = vmul.f32 %v580_v26, %v578_v12  ;;  %v615_v12 = vld [vmem:[#allocation3 + $0x52] sm:$0xff]  ;;  %v601_v41 = vld [vmem:[#allocation3 + $0x68] sm:$0xff] }
  0x8a   :  { %542 = vst.msk [vmem:[#allocation3 + $0x171] sm:$0xff] %vm8_vm0, %v525_v40  ;;  %v527_v62 = vsub.f32 1.0, %v511_v42  ;;  %v659_v57 = vmul.f32 %v643_v46, %v595_v55  ;;  %v645_v3 = vmul.f32 %v629_v58, %v581_v59  ;;  %v631_v35 = vmul.f32 %v581_v59, %v579_v15  ;;  %v616_v25 = vld [vmem:[#allocation3 + $0x62] sm:$0xff]  ;;  %v617_v21 = vld [vmem:[#allocation3 + $0x6a] sm:$0xff]  ;;  %v602_v44 = vld [vmem:[#allocation3 + $0x78] sm:$0xff] }
  0x8b   :  { %543 = vst.msk [vmem:[#allocation3 + $0x181] sm:$0xff] %vm8_vm0, %v526_v36  ;;  %v674_v28 = vmul.f32 %v658_v50, %v610_v53  ;;  %v660_v43 = vmul.f32 %v644_v48, %v596_v0  ;;  %v646_v31 = vmul.f32 %v630_v56, %v582_v24  ;;  %v632_v7 = vmul.f32 %v582_v24, %v580_v26  ;;  %v588_v60 = vld [vmem:[#allocation3 + $0xa9] sm:$0xff]  ;;  %v603_v55 = vld [vmem:[#allocation3 + $0x80] sm:$0xff] }
  0x8c   :  { %544 = vst.msk [vmem:[#allocation3 + $0x189] sm:$0xff] %vm8_vm0, %v527_v62  ;;  %v675_v38 = vmul.f32 %v659_v57, %v611_v5  ;;  %v661_v39 = vmul.f32 %v645_v3, %v597_v23  ;;  %v647_v37 = vmul.f32 %v631_v35, %v583_v29  ;;  %v633_v13 = vmul.f32 %v583_v29, %v581_v59  ;;  %v589_v59 = vld [vmem:[#allocation3 + $0xb1] sm:$0xff]  ;;  %v618_v53 = vld [vmem:[#allocation3 + $0x7a] sm:$0xff]  ;;  %v619_v5 = vld [vmem:[#allocation3 + $0x82] sm:$0xff] }
  0x8d   :  { %v690_v52 = vsub.f32 1.0, %v674_v28  ;;  %v676_v14 = vmul.f32 %v660_v43, %v612_v18  ;;  %v662_v20 = vmul.f32 %v646_v31, %v598_v45  ;;  %v648_v54 = vmul.f32 %v632_v7, %v584_v2  ;;  %v604_v0 = vld [vmem:[#allocation3 + $0x90] sm:$0xff]  ;;  %v605_v23 = vld [vmem:[#allocation3 + $0x98] sm:$0xff]  ;;  %v606_v45 = vld [vmem:[#allocation3 + $0xa8] sm:$0xff] }
  0x8e   :  { %v691_v51 = vsub.f32 1.0, %v675_v38  ;;  %v677_v6 = vmul.f32 %v661_v39, %v613_v61  ;;  %v663_v1 = vmul.f32 %v647_v37, %v599_v30  ;;  %v649_v63 = vmul.f32 %v633_v13, %v585_v16  ;;  %v620_v18 = vld [vmem:[#allocation3 + $0x92] sm:$0xff]  ;;  %v621_v61 = vld [vmem:[#allocation3 + $0x9a] sm:$0xff] }
  0x8f   :  { %706 = vst.msk [vmem:[%s1644_s1] sm:$0xff] %vm8_vm0, %v690_v52  ;;  %v692_v27 = vsub.f32 1.0, %v676_v14  ;;  %v678_v11 = vmul.f32 %v662_v20, %v614_v17  ;;  %v664_v10 = vmul.f32 %v648_v54, %v600_v9  ;;  %v634_v49 = vmul.f32 %v584_v2, %v582_v24  ;;  %v590_v24 = vld [vmem:[#allocation3 + $0xc1] sm:$0xff]  ;;  %v607_v30 = vld [vmem:[#allocation3 + $0xb0] sm:$0xff] }
  0x90   :  { %707 = vst.msk [vmem:[%s1644_s1 + $0x8] sm:$0xff] %vm8_vm0, %v691_v51  ;;  %v693_v19 = vsub.f32 1.0, %v677_v6  ;;  %v679_v15 = vmul.f32 %v663_v1, %v615_v12  ;;  %v665_v32 = vmul.f32 %v649_v63, %v601_v41  ;;  %v635_v33 = vmul.f32 %v585_v16, %v583_v29  ;;  %v591_v29 = vld [vmem:[#allocation3 + $0xc9] sm:$0xff]  ;;  %v608_v9 = vld [vmem:[#allocation3 + $0xc0] sm:$0xff]  ;;  %v623_v12 = vld [vmem:[#allocation3 + $0xb2] sm:$0xff] }
  0x91   :  { %708 = vst.msk [vmem:[%s1644_s1 + $0x10] sm:$0xff] %vm8_vm0, %v692_v27  ;;  %v694_v26 = vsub.f32 1.0, %v678_v11  ;;  %v680_v22 = vmul.f32 %v664_v10, %v616_v25  ;;  %v650_v34 = vmul.f32 %v634_v49, %v586_v8  ;;  %v636_v47 = vmul.f32 %v586_v8, %v584_v2  ;;  %v592_v2 = vld [vmem:[#allocation3 + $0xd9] sm:$0xff]  ;;  %v622_v17 = vld [vmem:[#allocation3 + $0xaa] sm:$0xff]  ;;  %v624_v25 = vld [vmem:[#allocation3 + $0xc2] sm:$0xff] }
  0x92   :  { %709 = vst.msk [vmem:[%s1644_s1 + $0x18] sm:$0xff] %vm8_vm0, %v693_v19  ;;  %v695_v40 = vsub.f32 1.0, %v679_v15  ;;  %v681_v42 = vmul.f32 %v665_v32, %v617_v21  ;;  %v651_v46 = vmul.f32 %v635_v33, %v587_v4  ;;  %v637_v58 = vmul.f32 %v587_v4, %v585_v16  ;;  %v593_v16 = vld [vmem:[#allocation3 + $0xe1] sm:$0xff]  ;;  %v625_v21 = vld [vmem:[#allocation3 + $0xca] sm:$0xff] }
  0x93   :  { %710 = vst.msk [vmem:[%s1644_s1 + $0x20] sm:$0xff] %vm8_vm0, %v694_v26  ;;  %v696_v36 = vsub.f32 1.0, %v680_v22  ;;  %v666_v50 = vmul.f32 %v650_v34, %v602_v44  ;;  %v652_v48 = vmul.f32 %v636_v47, %v588_v60  ;;  %v638_v56 = vmul.f32 %v588_v60, %v586_v8  ;;  %v756_v8 = vld [vmem:[#allocation3 + $0xf1] sm:$0xff]  ;;  %v609_v41 = vld [vmem:[#allocation3 + $0xc8] sm:$0xff] }
  0x94   :  { %711 = vst.msk [vmem:[%s1644_s1 + $0x28] sm:$0xff] %vm8_vm0, %v695_v40  ;;  %v697_v62 = vsub.f32 1.0, %v681_v42  ;;  %v667_v57 = vmul.f32 %v651_v46, %v603_v55  ;;  %v653_v3 = vmul.f32 %v637_v58, %v589_v59  ;;  %v639_v35 = vmul.f32 %v589_v59, %v587_v4  ;;  %v757_v4 = vld [vmem:[#allocation3 + $0xf9] sm:$0xff] }
  0x95   :  { %712 = vst.msk [vmem:[%s1644_s1 + $0x30] sm:$0xff] %vm8_vm0, %v696_v36  ;;  %v682_v28 = vmul.f32 %v666_v50, %v618_v53  ;;  %v668_v43 = vmul.f32 %v652_v48, %v604_v0  ;;  %v654_v31 = vmul.f32 %v638_v56, %v590_v24  ;;  %v640_v7 = vmul.f32 %v590_v24, %v588_v60  ;;  %v758_v60 = vld [vmem:[#allocation3 + $0x109] sm:$0xff]  ;;  %v772_v44 = vld [vmem:[#allocation3 + $0xd8] sm:$0xff]  ;;  %v773_v55 = vld [vmem:[#allocation3 + $0xe0] sm:$0xff] }
  0x96   :  { %713 = vst.msk [vmem:[%s1644_s1 + $0x38] sm:$0xff] %vm8_vm0, %v697_v62  ;;  %v683_v38 = vmul.f32 %v667_v57, %v619_v5  ;;  %v669_v39 = vmul.f32 %v653_v3, %v605_v23  ;;  %v655_v37 = vmul.f32 %v639_v35, %v591_v29  ;;  %v641_v13 = vmul.f32 %v591_v29, %v589_v59  ;;  %v759_v59 = vld [vmem:[#allocation3 + $0x111] sm:$0xff]  ;;  %v788_v53 = vld [vmem:[#allocation3 + $0xda] sm:$0xff]  ;;  %v789_v5 = vld [vmem:[#allocation3 + $0xe2] sm:$0xff] }
  0x97   :  { %v698_v52 = vsub.f32 1.0, %v682_v28  ;;  %v684_v14 = vmul.f32 %v668_v43, %v620_v18  ;;  %v670_v20 = vmul.f32 %v654_v31, %v606_v45  ;;  %v656_v54 = vmul.f32 %v640_v7, %v592_v2  ;;  %v774_v0 = vld [vmem:[#allocation3 + $0xf0] sm:$0xff]  ;;  %v775_v23 = vld [vmem:[#allocation3 + $0xf8] sm:$0xff]  ;;  %v776_v45 = vld [vmem:[#allocation3 + $0x108] sm:$0xff] }
  0x98   :  { %v699_v51 = vsub.f32 1.0, %v683_v38  ;;  %v685_v6 = vmul.f32 %v669_v39, %v621_v61  ;;  %v671_v1 = vmul.f32 %v655_v37, %v607_v30  ;;  %v657_v63 = vmul.f32 %v641_v13, %v593_v16  ;;  %v790_v18 = vld [vmem:[#allocation3 + $0xf2] sm:$0xff]  ;;  %v791_v61 = vld [vmem:[#allocation3 + $0xfa] sm:$0xff] }
  0x99   :  { %714 = vst.msk [vmem:[%s1644_s1 + $0x40] sm:$0xff] %vm8_vm0, %v698_v52  ;;  %v700_v27 = vsub.f32 1.0, %v684_v14  ;;  %v686_v11 = vmul.f32 %v670_v20, %v622_v17  ;;  %v672_v10 = vmul.f32 %v656_v54, %v608_v9  ;;  %v804_v49 = vmul.f32 %v592_v2, %v590_v24  ;;  %v760_v24 = vld [vmem:[#allocation3 + $0x121] sm:$0xff]  ;;  %v777_v30 = vld [vmem:[#allocation3 + $0x110] sm:$0xff] }
  0x9a   :  { %715 = vst.msk [vmem:[%s1644_s1 + $0x48] sm:$0xff] %vm8_vm0, %v699_v51  ;;  %v701_v19 = vsub.f32 1.0, %v685_v6  ;;  %v687_v15 = vmul.f32 %v671_v1, %v623_v12  ;;  %v673_v32 = vmul.f32 %v657_v63, %v609_v41  ;;  %v805_v33 = vmul.f32 %v593_v16, %v591_v29  ;;  %v761_v29 = vld [vmem:[#allocation3 + $0x129] sm:$0xff]  ;;  %v778_v9 = vld [vmem:[#allocation3 + $0x120] sm:$0xff]  ;;  %v793_v12 = vld [vmem:[#allocation3 + $0x112] sm:$0xff] }
  0x9b   :  { %716 = vst.msk [vmem:[%s1644_s1 + $0x50] sm:$0xff] %vm8_vm0, %v700_v27  ;;  %v702_v26 = vsub.f32 1.0, %v686_v11  ;;  %v688_v22 = vmul.f32 %v672_v10, %v624_v25  ;;  %v820_v34 = vmul.f32 %v804_v49, %v756_v8  ;;  %v806_v47 = vmul.f32 %v756_v8, %v592_v2  ;;  %v762_v2 = vld [vmem:[#allocation3 + $0x139] sm:$0xff]  ;;  %v792_v17 = vld [vmem:[#allocation3 + $0x10a] sm:$0xff]  ;;  %v794_v25 = vld [vmem:[#allocation3 + $0x122] sm:$0xff] }
  0x9c   :  { %717 = vst.msk [vmem:[%s1644_s1 + $0x58] sm:$0xff] %vm8_vm0, %v701_v19  ;;  %v703_v40 = vsub.f32 1.0, %v687_v15  ;;  %v689_v42 = vmul.f32 %v673_v32, %v625_v21  ;;  %v821_v46 = vmul.f32 %v805_v33, %v757_v4  ;;  %v807_v58 = vmul.f32 %v757_v4, %v593_v16  ;;  %v763_v16 = vld [vmem:[#allocation3 + $0x141] sm:$0xff]  ;;  %v795_v21 = vld [vmem:[#allocation3 + $0x12a] sm:$0xff] }
  0x9d   :  { %718 = vst.msk [vmem:[%s1644_s1 + $0x60] sm:$0xff] %vm8_vm0, %v702_v26  ;;  %v704_v36 = vsub.f32 1.0, %v688_v22  ;;  %v836_v50 = vmul.f32 %v820_v34, %v772_v44  ;;  %v822_v48 = vmul.f32 %v806_v47, %v758_v60  ;;  %v808_v56 = vmul.f32 %v758_v60, %v756_v8  ;;  %v764_v8 = vld [vmem:[#allocation3 + $0x151] sm:$0xff]  ;;  %v779_v41 = vld [vmem:[#allocation3 + $0x128] sm:$0xff] }
  0x9e   :  { %719 = vst.msk [vmem:[%s1644_s1 + $0x68] sm:$0xff] %vm8_vm0, %v703_v40  ;;  %v705_v62 = vsub.f32 1.0, %v689_v42  ;;  %v837_v57 = vmul.f32 %v821_v46, %v773_v55  ;;  %v823_v3 = vmul.f32 %v807_v58, %v759_v59  ;;  %v809_v35 = vmul.f32 %v759_v59, %v757_v4  ;;  %v765_v4 = vld [vmem:[#allocation3 + $0x159] sm:$0xff] }
  0x9f   :  { %720 = vst.msk [vmem:[%s1644_s1 + $0x70] sm:$0xff] %vm8_vm0, %v704_v36  ;;  %v852_v28 = vmul.f32 %v836_v50, %v788_v53  ;;  %v838_v43 = vmul.f32 %v822_v48, %v774_v0  ;;  %v824_v31 = vmul.f32 %v808_v56, %v760_v24  ;;  %v810_v7 = vmul.f32 %v760_v24, %v758_v60  ;;  %v766_v60 = vld [vmem:[#allocation3 + $0x169] sm:$0xff]  ;;  %v780_v44 = vld [vmem:[#allocation3 + $0x138] sm:$0xff]  ;;  %v781_v55 = vld [vmem:[#allocation3 + $0x140] sm:$0xff] }
  0xa0   :  { %721 = vst.msk [vmem:[%s1644_s1 + $0x78] sm:$0xff] %vm8_vm0, %v705_v62  ;;  %v853_v38 = vmul.f32 %v837_v57, %v789_v5  ;;  %v839_v39 = vmul.f32 %v823_v3, %v775_v23  ;;  %v825_v37 = vmul.f32 %v809_v35, %v761_v29  ;;  %v811_v13 = vmul.f32 %v761_v29, %v759_v59  ;;  %v767_v59 = vld [vmem:[#allocation3 + $0x171] sm:$0xff]  ;;  %v796_v53 = vld [vmem:[#allocation3 + $0x13a] sm:$0xff] }
  0xa1   :  { %v868_v52 = vsub.f32 1.0, %v852_v28  ;;  %v854_v14 = vmul.f32 %v838_v43, %v790_v18  ;;  %v840_v20 = vmul.f32 %v824_v31, %v776_v45  ;;  %v826_v54 = vmul.f32 %v810_v7, %v762_v2  ;;  %v782_v0 = vld [vmem:[#allocation3 + $0x150] sm:$0xff]  ;;  %v770_v28 = vld [vmem:[#allocation3 + $0x199] sm:$0xff]  ;;  %v797_v43 = vld [vmem:[#allocation3 + $0x142] sm:$0xff] }
  0xa2   :  { %v869_v51 = vsub.f32 1.0, %v853_v38  ;;  %v855_v6 = vmul.f32 %v839_v39, %v791_v61  ;;  %v841_v1 = vmul.f32 %v825_v37, %v777_v30  ;;  %v827_v63 = vmul.f32 %v811_v13, %v763_v16  ;;  %v783_v31 = vld [vmem:[#allocation3 + $0x158] sm:$0xff]  ;;  %v771_v18 = vld [vmem:[#allocation3 + $0x1a1] sm:$0xff] }
  0xa3   :  { %921 = vst.msk [vmem:[%s1644_s1 + $0x80] sm:$0xff] %vm8_vm0, %v868_v52  ;;  %v870_v27 = vsub.f32 1.0, %v854_v14  ;;  %v856_v11 = vmul.f32 %v840_v20, %v792_v17  ;;  %v842_v10 = vmul.f32 %v826_v54, %v778_v9  ;;  %v812_v49 = vmul.f32 %v762_v2, %v760_v24  ;;  %v768_v24 = vld [vmem:[#allocation3 + $0x181] sm:$0xff]  ;;  %v798_v45 = vld [vmem:[#allocation3 + $0x152] sm:$0xff]  ;;  %v800_v17 = vld [vmem:[#allocation3 + $0x16a] sm:$0xff] }
  0xa4   :  { %922 = vst.msk [vmem:[%s1644_s1 + $0x88] sm:$0xff] %vm8_vm0, %v869_v51  ;;  %v871_v19 = vsub.f32 1.0, %v855_v6  ;;  %v857_v15 = vmul.f32 %v841_v1, %v793_v12  ;;  %v843_v32 = vmul.f32 %v827_v63, %v779_v41  ;;  %v813_v33 = vmul.f32 %v763_v16, %v761_v29  ;;  %v769_v29 = vld [vmem:[#allocation3 + $0x189] sm:$0xff]  ;;  %v799_v20 = vld [vmem:[#allocation3 + $0x15a] sm:$0xff] }
  0xa5   :  { %923 = vst.msk [vmem:[%s1644_s1 + $0x90] sm:$0xff] %vm8_vm0, %v870_v27  ;;  %v872_v26 = vsub.f32 1.0, %v856_v11  ;;  %v858_v22 = vmul.f32 %v842_v10, %v794_v25  ;;  %v828_v34 = vmul.f32 %v812_v49, %v764_v8  ;;  %v814_v47 = vmul.f32 %v764_v8, %v762_v2  ;;  %v784_v2 = vld [vmem:[#allocation3 + $0x168] sm:$0xff]  ;;  %v785_v54 = vld [vmem:[#allocation3 + $0x170] sm:$0xff]  ;;  %v786_v9 = vld [vmem:[#allocation3 + $0x180] sm:$0xff] }
  0xa6   :  { %924 = vst.msk [vmem:[%s1644_s1 + $0x98] sm:$0xff] %vm8_vm0, %v871_v19  ;;  %v873_v40 = vsub.f32 1.0, %v857_v15  ;;  %v859_v42 = vmul.f32 %v843_v32, %v795_v21  ;;  %v829_v46 = vmul.f32 %v813_v33, %v765_v4  ;;  %v815_v58 = vmul.f32 %v765_v4, %v763_v16  ;;  %v801_v11 = vld [vmem:[#allocation3 + $0x172] sm:$0xff]  ;;  %v787_v10 = vld [vmem:[#allocation3 + $0x188] sm:$0xff] }
  0xa7   :  { %925 = vst.msk [vmem:[%s1644_s1 + $0xa0] sm:$0xff] %vm8_vm0, %v872_v26  ;;  %v874_v36 = vsub.f32 1.0, %v858_v22  ;;  %v844_v50 = vmul.f32 %v828_v34, %v780_v44  ;;  %v830_v48 = vmul.f32 %v814_v47, %v766_v60  ;;  %v816_v56 = vmul.f32 %v766_v60, %v764_v8  ;;  %v803_v32 = vld [vmem:[#allocation3 + $0x18a] sm:$0xff] }
  0xa8   :  { %926 = vst.msk [vmem:[%s1644_s1 + $0xa8] sm:$0xff] %vm8_vm0, %v873_v40  ;;  %v875_v62 = vsub.f32 1.0, %v859_v42  ;;  %v845_v57 = vmul.f32 %v829_v46, %v781_v55  ;;  %v831_v3 = vmul.f32 %v815_v58, %v767_v59  ;;  %v817_v35 = vmul.f32 %v767_v59, %v765_v4  ;;  %v802_v4 = vld [vmem:[#allocation3 + $0x182] sm:$0xff] }
  0xa9   :  { %927 = vst.msk [vmem:[%s1644_s1 + $0xb0] sm:$0xff] %vm8_vm0, %v874_v36  ;;  %v860_v5 = vmul.f32 %v844_v50, %v796_v53  ;;  %v846_v23 = vmul.f32 %v830_v48, %v782_v0  ;;  %v832_v7 = vmul.f32 %v816_v56, %v768_v24  ;;  %v818_v38 = vmul.f32 %v768_v24, %v766_v60 }
  0xaa   :  { %928 = vst.msk [vmem:[%s1644_s1 + $0xb8] sm:$0xff] %vm8_vm0, %v875_v62  ;;  %v861_v39 = vmul.f32 %v845_v57, %v797_v43  ;;  %v847_v37 = vmul.f32 %v831_v3, %v783_v31  ;;  %v833_v13 = vmul.f32 %v817_v35, %v769_v29  ;;  %v819_v52 = vmul.f32 %v769_v29, %v767_v59 }
  0xab   :  { %v876_v14 = vsub.f32 1.0, %v860_v5  ;;  %v862_v61 = vmul.f32 %v846_v23, %v798_v45  ;;  %v848_v30 = vmul.f32 %v832_v7, %v784_v2  ;;  %v834_v16 = vmul.f32 %v818_v38, %v770_v28 }
  0xac   :  { %v877_v51 = vsub.f32 1.0, %v861_v39  ;;  %v863_v6 = vmul.f32 %v847_v37, %v799_v20  ;;  %v849_v1 = vmul.f32 %v833_v13, %v785_v54  ;;  %v835_v63 = vmul.f32 %v819_v52, %v771_v18 }
  0xad   :  { %929 = vst.msk [vmem:[%s1644_s1 + $0xc0] sm:$0xff] %vm8_vm0, %v876_v14  ;;  %v878_v8 = vsub.f32 1.0, %v862_v61  ;;  %v864_v27 = vmul.f32 %v848_v30, %v800_v17  ;;  %v850_v12 = vmul.f32 %v834_v16, %v786_v9 }
  0xae   :  { %930 = vst.msk [vmem:[%s1644_s1 + $0xc8] sm:$0xff] %vm8_vm0, %v877_v51  ;;  %v879_v41 = vsub.f32 1.0, %v863_v6  ;;  %v865_v49 = vmul.f32 %v849_v1, %v801_v11  ;;  %v851_v19 = vmul.f32 %v835_v63, %v787_v10 }
  0xaf   :  { %931 = vst.msk [vmem:[%s1644_s1 + $0xd0] sm:$0xff] %vm8_vm0, %v878_v8  ;;  %v880_v15 = vsub.f32 1.0, %v864_v27  ;;  %v866_v25 = vmul.f32 %v850_v12, %v802_v4 }
  0xb0   :  { %932 = vst.msk [vmem:[%s1644_s1 + $0xd8] sm:$0xff] %vm8_vm0, %v879_v41  ;;  %v881_v33 = vsub.f32 1.0, %v865_v49  ;;  %v867_v60 = vmul.f32 %v851_v19, %v803_v32 }
  0xb1   :  { %933 = vst.msk [vmem:[%s1644_s1 + $0xe0] sm:$0xff] %vm8_vm0, %v880_v15  ;;  %v882_v26 = vsub.f32 1.0, %v866_v25 }
  0xb2   :  { %934 = vst.msk [vmem:[%s1644_s1 + $0xe8] sm:$0xff] %vm8_vm0, %v881_v33  ;;  %v883_v22 = vsub.f32 1.0, %v867_v60 }
  0xb3   :  { %935 = vst.msk [vmem:[%s1644_s1 + $0xf0] sm:$0xff] %vm8_vm0, %v882_v26 }
  0xb4   :  { %936 = vst.msk [vmem:[%s1644_s1 + $0xf8] sm:$0xff] %vm8_vm0, %v883_v22 }

</bundles_post_ra>
